<compile_context>
chip_gen: v7x
topology: tpu7x:2x2x1
jax: 0.10.0
libtpu: 0.0.40
codegen_flags: <defaults>
</compile_context>

<pallas_src>
import numpy as np

import jax
import jax.numpy as jnp
from jax import lax
from jax.experimental import pallas as pl
from jax.experimental.pallas import tpu as pltpu


# ----------------------------------------------------------------------------
# Fixed 3x3 filters and stencil-as-matmul constant matrices
# ----------------------------------------------------------------------------
# TODO(synk): exact "SinSobel" kernel constants come from the original repo;
# classic normalized Sobel x/y kernels are used here.
_SOBEL_X = (np.outer([1.0, 2.0, 1.0], [-1.0, 0.0, 1.0]) / 8.0).astype(np.float32)
_SOBEL_Y = _SOBEL_X.T.copy()

_g1 = np.exp(-np.array([-1.0, 0.0, 1.0]) ** 2 / 2.0)
_GAUSS = np.outer(_g1, _g1).astype(np.float32)
_GAUSS /= _GAUSS.sum()


def _conv3x3_matrix(H, W, k3x3):
    """(HW, HW) matrix M with (x_flat @ M) == zero-padded depthwise 3x3 conv."""
    HW = H * W
    M = np.zeros((HW, HW), np.float32)
    for h in range(H):
        for w in range(W):
            p = h * W + w
            for dy in (-1, 0, 1):
                for dx in (-1, 0, 1):
                    hh, ww = h + dy, w + dx
                    if 0 <= hh < H and 0 <= ww < W:
                        M[hh * W + ww, p] += k3x3[dy + 1, dx + 1]
    return M


def _upsample1d_matrix(n):
    """(n, 2n) bilinear 2x upsample (half-pixel centers, edge clamp)."""
    U = np.zeros((n, 2 * n), np.float32)
    for i in range(2 * n):
        s = (i + 0.5) / 2.0 - 0.5
        i0 = int(np.floor(s))
        f = s - i0
        for idx, wgt in ((i0, 1.0 - f), (i0 + 1, f)):
            U[min(max(idx, 0), n - 1), i] += wgt
    return U


def _upsample_smooth_matrix(H, W):
    """(HW, 4HW): 2x bilinear upsample followed by 3x3 gaussian smoothing."""
    Uh = _upsample1d_matrix(H)                       # (H, 2H)
    Uw = _upsample1d_matrix(W)                       # (W, 2W)
    up = np.einsum("ab,cd->acbd", Uh, Uw).reshape(H * W, 4 * H * W)
    return (up @ _conv3x3_matrix(2 * H, 2 * W, _GAUSS)).astype(np.float32)


# ----------------------------------------------------------------------------
# In-kernel helpers (plain jnp, traced inside the Pallas kernel)
# ----------------------------------------------------------------------------
def _instance_norm_rows(x):
    """F.instance_norm: per (sample, channel-row) norm over spatial lanes."""
    mu = jnp.mean(x, axis=-1, keepdims=True)
    xc = x - mu
    var = jnp.mean(xc * xc, axis=-1, keepdims=True)
    return xc * lax.rsqrt(var + 1e-5)


def _dyna_block(x, cout, w1, bias_or_term, w2, b2, w3, b3):
    """Per-sample dynamic residual block of 1x1 convs on (Cin, HW) activations.
    Shortcut and first hidden matmul are packed into one MXU pass; the first
    bias argument may already include a hoisted partial-matmul contribution."""
    y1 = jnp.dot(w1, x, preferred_element_type=jnp.float32) + bias_or_term
    short = y1[:cout]                                   # sublane slice, cout % 8 == 0
    h = jnp.maximum(y1[cout:], 0.0)
    h = jnp.maximum(jnp.dot(w2, h, preferred_element_type=jnp.float32) + b2, 0.0)
    return short + jnp.dot(w3, h, preferred_element_type=jnp.float32) + b3


# ----------------------------------------------------------------------------
# The fused per-layer Pallas kernel
# ----------------------------------------------------------------------------
def _make_layer_kernel(n_filter, c_wave, n_calls, leak, last):
    F = n_filter
    C = c_wave

    def kernel(*refs):
        if not last:
            (out_ref, winit_ref, sx_ref, sy_ref,
             wc1_ref, wb1_ref, ww2_ref, wb2_ref, ww3_ref, wb3_ref,
             fcs_ref, fcw_ref, fb1_ref, fw2_ref, fb2_ref, fw3_ref, fb3_ref,
             ug_ref, o_ref) = refs
        else:
            (out_ref, winit_ref, sx_ref, sy_ref,
             wc1_ref, wb1_ref, ww2_ref, wb2_ref, ww3_ref, wb3_ref,
             fcs_ref, fcw_ref, fb1_ref, fw2_ref, fb2_ref, fw3_ref, fb3_ref,
             ow_ref, ob_ref, emb_ref, raw_ref, cl_ref) = refs

        sx = sx_ref[...]                                       # (HW, HW) bf16
        sy = sy_ref[...]

        # ---- wave prep (fused; once per (layer, sample)) --------------------
        wv = winit_ref[...]                                    # (C, HW) f32
        wv16 = wv.astype(jnp.bfloat16)
        gxw = jnp.dot(wv16, sx, preferred_element_type=jnp.float32)
        gyw = jnp.dot(wv16, sy, preferred_element_type=jnp.float32)
        sobw = jnp.concatenate([gxw, gyw, wv], axis=0)         # (3C, HW)
        wave = _dyna_block(sobw, F, wc1_ref[0], wb1_ref[0], ww2_ref[0],
                           wb2_ref[0], ww3_ref[0], wb3_ref[0])
        wave = _instance_norm_rows(wave)                       # (F, HW)

        # Hoisted wave contribution to the frac block's first matmul (constant
        # over the n_calls loop).
        wave_term = (jnp.dot(fcw_ref[0], wave, preferred_element_type=jnp.float32)
                     + fb1_ref[0])                             # (6F, HW)

        fcs = fcs_ref[0]
        fw2, fb2 = fw2_ref[0], fb2_ref[0]
        fw3, fb3 = fw3_ref[0], fb3_ref[0]

        # ---- n_calls of the CA update, fully unrolled in-kernel -------------
        def call_body(_, acc):
            a16 = acc.astype(jnp.bfloat16)
            gx = jnp.dot(a16, sx, preferred_element_type=jnp.float32)
            gy = jnp.dot(a16, sy, preferred_element_type=jnp.float32)
            sob = _instance_norm_rows(jnp.concatenate([gx, gy, acc], axis=0))
            y = _dyna_block(sob, 2 * F, fcs, wave_term, fw2, fb2, fw3, fb3)
            val, gate = y[:F], y[F:]
            # TODO(synk): repo-local `hardsigmoid` not provided; relu6(x+3)/6.
            hsg = jnp.clip(gate / 6.0 + 0.5, 0.0, 1.0)
            return acc + leak * (val * hsg)

        acc = lax.fori_loop(0, n_calls, call_body,
                            out_ref[0].astype(jnp.float32), unroll=True)

        # ---- fused epilogue ---------------------------------------------------
        if not last:
            o_ref[0] = jnp.dot(acc.astype(jnp.bfloat16), ug_ref[...],
                               preferred_element_type=jnp.float32
                               ).astype(o_ref.dtype)
        else:
            emb_ref[0] = acc.astype(emb_ref.dtype)
            y = (jnp.dot(ow_ref[...], acc, preferred_element_type=jnp.float32)
                 + ob_ref[...])
            raw_ref[0] = y.astype(raw_ref.dtype)
            cl_ref[0] = jnp.clip(y, -1.0, 1.0).astype(cl_ref.dtype)

    return kernel


def layer_step(out_in, wave_init, sx, sy, wave_w, frac_w, leak, n_calls,
               ug=None, out_w=None, out_b=None):
    """One full decoder layer (wave prep + n_calls CA updates + epilogue) in a
    single pallas_call; grid=(B,) is the only grid axis and it is parallel."""
    wc1, wb1, ww2, wb2, ww3, wb3 = wave_w
    fcs, fcw, fb1, fw2, fb2, fw3, fb3 = frac_w
    B, F, HW = out_in.shape
    C = wave_init.shape[0]
    last = ug is None

    def per_b(arr):
        s = arr.shape[1:]
        return pl.BlockSpec((1,) + s, lambda b, _s=s: (b,) + (0,) * len(_s))

    def shared(arr):
        nd = arr.ndim
        return pl.BlockSpec(arr.shape, lambda b, _n=nd: (0,) * _n)

    args = [out_in, wave_init, sx, sy, wc1, wb1, ww2, wb2, ww3, wb3,
            fcs, fcw, fb1, fw2, fb2, fw3, fb3]
    in_specs = ([per_b(out_in), shared(wave_init), shared(sx), shared(sy)]
                + [per_b(a) for a in (wc1, wb1, ww2, wb2, ww3, wb3,
                                      fcs, fcw, fb1, fw2, fb2, fw3, fb3)])

    if not last:
        args.append(ug)
        in_specs.append(shared(ug))
        HW_out = ug.shape[1]
        out_shape = jax.ShapeDtypeStruct((B, F, HW_out), jnp.float32)
        out_specs = pl.BlockSpec((1, F, HW_out), lambda b: (b, 0, 0))
        out_bytes = B * F * HW_out * 4
        flops_epi = 2 * F * HW * HW_out
    else:
        Cout = out_w.shape[0]
        args += [out_w, out_b]
        in_specs += [shared(out_w), shared(out_b)]
        out_shape = (jax.ShapeDtypeStruct((B, F, HW), jnp.float32),
                     jax.ShapeDtypeStruct((B, Cout, HW), jnp.float32),
                     jax.ShapeDtypeStruct((B, Cout, HW), jnp.float32))
        out_specs = (pl.BlockSpec((1, F, HW), lambda b: (b, 0, 0)),
                     pl.BlockSpec((1, Cout, HW), lambda b: (b, 0, 0)),
                     pl.BlockSpec((1, Cout, HW), lambda b: (b, 0, 0)))
        out_bytes = B * (F + 2 * Cout) * HW * 4
        flops_epi = 2 * Cout * F * HW

    # Advisory cost estimate (helps XLA overlap the hoisted hypernetwork work).
    flops_wave = (2 * (2 * C * HW * HW)
                  + 2 * HW * ((F + C) * 3 * C + C * C + F * C)
                  + 2 * 6 * F * F * HW)
    flops_call = (2 * (2 * F * HW * HW)
                  + 2 * HW * (6 * F * 3 * F + 4 * F * 4 * F + 2 * F * 4 * F))
    flops = int(B * (flops_wave + n_calls * flops_call + flops_epi))
    bytes_accessed = int(sum(int(a.size) * a.dtype.itemsize for a in args)
                         + out_bytes)

    return pl.pallas_call(
        _make_layer_kernel(F, C, n_calls, float(leak), last),
        out_shape=out_shape,
        grid=(B,),
        in_specs=in_specs,
        out_specs=out_specs,
        compiler_params=pltpu.CompilerParams(
            dimension_semantics=("parallel",),
            vmem_limit_bytes=32 * 1024 * 1024),
        cost_estimate=pl.CostEstimate(
            flops=flops,
            transcendentals=int(B * (n_calls * 3 * F + 2 * F)),
            bytes_accessed=bytes_accessed),
    )(*args)


# ----------------------------------------------------------------------------
# Hypernetwork (hoisted, plain XLA) and deterministic synthetic parameters
# ----------------------------------------------------------------------------
def _hyper_dyna_weights(p, exp_lat):
    """lat -> per-sample packed 1x1-conv weights in (Cout, Cin) layout."""
    B = exp_lat.shape[0]
    fin, fout, fhid = p["fin"], p["fout"], p["fhid"]
    h = jax.nn.relu(exp_lat @ p["wh1"] + p["bh1"])
    theta = h @ p["wh2"] + p["bh2"]

    idx = [0]

    def take(*shape):
        n = int(np.prod(shape))
        w = theta[:, idx[0]:idx[0] + n].reshape((B,) + shape)
        idx[0] += n
        return w

    ws = take(fout, fin); bs = take(fout, 1)
    w1 = take(fhid, fin); b1 = take(fhid, 1)
    w2 = take(fhid, fhid); b2 = take(fhid, 1)
    w3 = take(fout, fhid); b3 = take(fout, 1)
    wcat1 = jnp.concatenate([ws, w1], axis=1)         # (B, fout+fhid, fin)
    bcat1 = jnp.concatenate([bs, b1], axis=1)         # (B, fout+fhid, 1)
    return wcat1, bcat1, w2, b2, w3, b3


def _init_dyna(key, lat_size, fin, fout, fhid, hyper_hidden):
    k1, k2, k3 = jax.random.split(key, 3)
    n_params = (fin * fout + fout + fin * fhid + fhid +
                fhid * fhid + fhid + fhid * fout + fout)
    return {
        "fin": fin, "fout": fout, "fhid": fhid,
        "wh1": jax.random.normal(k1, (lat_size, hyper_hidden), jnp.float32)
               * (1.0 / np.sqrt(lat_size)),
        "bh1": jnp.zeros((hyper_hidden,), jnp.float32),
        "wh2": jax.random.normal(k2, (hyper_hidden, n_params), jnp.float32) * 0.05,
        "bh2": jax.random.normal(k3, (n_params,), jnp.float32) * 0.05,
    }


def init_decoder_params(key, *, lat_size, image_size, channels, n_filter,
                        n_calls, n_seed=1):
    n_layers = int(np.log2(image_size)) - 1
    keys = list(jax.random.split(key, 16 + 8 * n_layers))
    ki = iter(keys)

    s0 = image_size // 2 ** (n_layers - 1)
    seed_vec = jax.random.normal(next(ki), (n_seed, n_filter), jnp.float32)
    seed_vec = seed_vec / jnp.linalg.norm(seed_vec, axis=1, keepdims=True)
    seed = jnp.broadcast_to(seed_vec[:, :, None], (n_seed, n_filter, s0 * s0))

    wave_inits, wave_convs, frac_convs = [], [], []
    sobel_x, sobel_y, upsmooth, sizes = [], [], [], []
    hyper_hidden_wave = int(lat_size ** 0.9)          # lat_factor = ls**0.9 / ls
    for i in range(n_layers):
        l_param = n_layers - 1 - i
        c_l = n_filter * (l_param + 1)
        s_l = image_size // 2 ** l_param
        sizes.append(s_l)
        wv = jax.random.normal(next(ki), (c_l,), jnp.float32)
        wv = wv / jnp.linalg.norm(wv)
        wave_inits.append(jnp.broadcast_to(wv[:, None], (c_l, s_l * s_l)))
        wave_convs.append(_init_dyna(next(ki), lat_size,
                                     fin=3 * c_l, fout=n_filter, fhid=c_l,
                                     hyper_hidden=hyper_hidden_wave))
        frac_convs.append(_init_dyna(next(ki), lat_size,
                                     fin=4 * n_filter, fout=2 * n_filter,
                                     fhid=4 * n_filter, hyper_hidden=lat_size))
        # bf16 constant stencil / upsample matrices (MXU-native, half the VMEM).
        # TODO(synk): switch to separable / shift-based stencils for image_size
        # >= 64 where the dense (HW,HW) matrices no longer fit VMEM.
        sobel_x.append(jnp.asarray(_conv3x3_matrix(s_l, s_l, _SOBEL_X),
                                   dtype=jnp.bfloat16))
        sobel_y.append(jnp.asarray(_conv3x3_matrix(s_l, s_l, _SOBEL_Y),
                                   dtype=jnp.bfloat16))
        upsmooth.append(jnp.asarray(_upsample_smooth_matrix(s_l, s_l),
                                    dtype=jnp.bfloat16)
                        if i < n_layers - 1 else None)

    lat_exp_scale = [jax.random.normal(next(ki), (lat_size,), jnp.float32) * 0.1
                     for _ in range(n_layers * n_calls)]
    leak = [0.1 for _ in range(n_layers)]

    out_w = jax.random.normal(next(ki), (channels, n_filter), jnp.float32) \
            * (1.0 / np.sqrt(n_filter))
    out_b = jax.random.normal(next(ki), (channels, 1), jnp.float32) * 0.01

    return {
        "n_layers": n_layers, "n_filter": n_filter, "n_calls": n_calls,
        "sizes": sizes, "seed": seed, "wave_inits": wave_inits,
        "wave_convs": wave_convs, "frac_convs": frac_convs,
        "sobel_x": sobel_x, "sobel_y": sobel_y, "upsmooth": upsmooth,
        "lat_exp_scale": lat_exp_scale, "leak": leak,
        "out_w": out_w, "out_b": out_b,
    }


# ----------------------------------------------------------------------------
# Decoder forward (ca_init=None, seed_n=0, gated=True, no log_mix / ce_out)
# ----------------------------------------------------------------------------
def decoder_forward(params, lat):
    B = lat.shape[0]
    n_layers = params["n_layers"]
    n_calls = params["n_calls"]
    F = params["n_filter"]
    sizes = params["sizes"]

    # Hoisted hypernetworks: all per-layer dynamic weights in plain XLA up
    # front so the fused Pallas layer kernels run back-to-back.  The frac
    # block's first weight is pre-split into its sobel / wave column blocks so
    # the wave contribution can be hoisted out of the in-kernel call loop.
    wave_w, frac_w = [], []
    for l in range(n_layers):
        exp_lat = lat * jnp.exp(params["lat_exp_scale"][l])      # ExpScale
        wave_w.append(_hyper_dyna_weights(params["wave_convs"][l], exp_lat))
        wcat1, bcat1, w2, b2, w3, b3 = _hyper_dyna_weights(
            params["frac_convs"][l], exp_lat)
        frac_w.append((wcat1[:, :, :3 * F], wcat1[:, :, 3 * F:],
                       bcat1, w2, b2, w3, b3))

    s0 = sizes[0]
    out = jnp.broadcast_to(params["seed"][0:1], (B, F, s0 * s0))   # seed_n = 0
    out_embs = [out.reshape(B, F, s0, s0)]

    out_raw = out_cl = None
    for l in range(n_layers):
        leak = float(np.clip(params["leak"][l], 0.001, 1000.0))
        if l < n_layers - 1:
            out = layer_step(out, params["wave_inits"][l],
                             params["sobel_x"][l], params["sobel_y"][l],
                             wave_w[l], frac_w[l], leak, n_calls,
                             ug=params["upsmooth"][l])
            s_out = sizes[l + 1]
        else:
            out, out_raw, out_cl = layer_step(
                out, params["wave_inits"][l],
                params["sobel_x"][l], params["sobel_y"][l],
                wave_w[l], frac_w[l], leak, n_calls,
                out_w=params["out_w"], out_b=params["out_b"])
            s_out = sizes[l]
        out_embs.append(out.reshape(B, F, s_out, s_out))

    # image_size is a power of two -> no final resize branch.
    s = sizes[-1]
    C = params["out_w"].shape[0]
    return (out_cl.reshape(B, C, s, s), out_embs, out_raw.reshape(B, C, s, s))


# ----------------------------------------------------------------------------
if __name__ == "__main__":
    batch = 2
    lat_size = 32
    image_size = 16
    channels = 3          # out_chan
    n_filter = 8
    n_calls = 2

    key = jax.random.PRNGKey(0)
    pkey, lkey = jax.random.split(key)
    params = init_decoder_params(pkey, lat_size=lat_size, image_size=image_size,
                                 channels=channels, n_filter=n_filter,
                                 n_calls=n_calls, n_seed=1)
    lat = jax.random.normal(lkey, (batch, lat_size), jnp.float32)

    out, out_embs, out_raw = decoder_forward(params, lat)
    jax.block_until_ready(out)
    jax.block_until_ready(out_raw)
    for e in out_embs:
        jax.block_until_ready(e)

    assert out.shape == (batch, channels, image_size, image_size), out.shape
    assert out_raw.shape == (batch, channels, image_size, image_size)
    assert len(out_embs) == int(np.log2(image_size))   # n_layers + 1 = 4
    assert bool(jnp.all(jnp.isfinite(out)))
    assert bool(jnp.all(jnp.isfinite(out_raw)))
    print("KERNEL_OK")
</pallas_src>

<mosaic_0001>
module attributes {stable_mosaic.version = 11 : i64} {
  func.func @kernel(%arg0: i32, %arg1: memref<1x8x16xf32, #tpu.memory_space<vmem>>, %arg2: memref<24x16xf32, #tpu.memory_space<vmem>>, %arg3: memref<16x16xbf16, #tpu.memory_space<vmem>>, %arg4: memref<16x16xbf16, #tpu.memory_space<vmem>>, %arg5: memref<1x32x72xf32, #tpu.memory_space<vmem>>, %arg6: memref<1x32x1xf32, #tpu.memory_space<vmem>>, %arg7: memref<1x24x24xf32, #tpu.memory_space<vmem>>, %arg8: memref<1x24x1xf32, #tpu.memory_space<vmem>>, %arg9: memref<1x8x24xf32, #tpu.memory_space<vmem>>, %arg10: memref<1x8x1xf32, #tpu.memory_space<vmem>>, %arg11: memref<1x48x24xf32, #tpu.memory_space<vmem>>, %arg12: memref<1x48x8xf32, #tpu.memory_space<vmem>>, %arg13: memref<1x48x1xf32, #tpu.memory_space<vmem>>, %arg14: memref<1x32x32xf32, #tpu.memory_space<vmem>>, %arg15: memref<1x32x1xf32, #tpu.memory_space<vmem>>, %arg16: memref<1x16x32xf32, #tpu.memory_space<vmem>>, %arg17: memref<1x16x1xf32, #tpu.memory_space<vmem>>, %arg18: memref<16x64xbf16, #tpu.memory_space<vmem>>, %arg19: memref<1x8x64xf32, #tpu.memory_space<vmem>>) attributes {dimension_semantics = [#tpu.dimension_semantics<parallel>], iteration_bounds = array<i64: 2>, scalar_prefetch = 0 : i64, scratch_operands = 0 : i64, tpu.core_type = #tpu.core_type<tc>, window_params = [{transform_indices = @transform_0, window_bounds = array<i64: 1, 8, 16>}, {pipeline_mode = #tpu.pipeline_mode<synchronous>, transform_indices = @transform_1, window_bounds = array<i64: 24, 16>}, {pipeline_mode = #tpu.pipeline_mode<synchronous>, transform_indices = @transform_2, window_bounds = array<i64: 16, 16>}, {pipeline_mode = #tpu.pipeline_mode<synchronous>, transform_indices = @transform_3, window_bounds = array<i64: 16, 16>}, {transform_indices = @transform_4, window_bounds = array<i64: 1, 32, 72>}, {transform_indices = @transform_5, window_bounds = array<i64: 1, 32, 1>}, {transform_indices = @transform_6, window_bounds = array<i64: 1, 24, 24>}, {transform_indices = @transform_7, window_bounds = array<i64: 1, 24, 1>}, {transform_indices = @transform_8, window_bounds = array<i64: 1, 8, 24>}, {transform_indices = @transform_9, window_bounds = array<i64: 1, 8, 1>}, {transform_indices = @transform_10, window_bounds = array<i64: 1, 48, 24>}, {transform_indices = @transform_11, window_bounds = array<i64: 1, 48, 8>}, {transform_indices = @transform_12, window_bounds = array<i64: 1, 48, 1>}, {transform_indices = @transform_13, window_bounds = array<i64: 1, 32, 32>}, {transform_indices = @transform_14, window_bounds = array<i64: 1, 32, 1>}, {transform_indices = @transform_15, window_bounds = array<i64: 1, 16, 32>}, {transform_indices = @transform_16, window_bounds = array<i64: 1, 16, 1>}, {pipeline_mode = #tpu.pipeline_mode<synchronous>, transform_indices = @transform_17, window_bounds = array<i64: 16, 64>}, {transform_indices = @transform_18, window_bounds = array<i64: 1, 8, 64>}]} {
    %c0 = arith.constant 0 : index
    %c0_0 = arith.constant 0 : index
    %0 = vector.load %arg3[%c0, %c0_0] : memref<16x16xbf16, #tpu.memory_space<vmem>>, vector<16x16xbf16>
    %c0_1 = arith.constant 0 : index
    %c0_2 = arith.constant 0 : index
    %1 = vector.load %arg4[%c0_1, %c0_2] : memref<16x16xbf16, #tpu.memory_space<vmem>>, vector<16x16xbf16>
    %c0_3 = arith.constant 0 : index
    %c0_4 = arith.constant 0 : index
    %2 = vector.load %arg2[%c0_3, %c0_4] : memref<24x16xf32, #tpu.memory_space<vmem>>, vector<24x16xf32>
    %3 = arith.truncf %2 : vector<24x16xf32> to vector<24x16xbf16>
    %cst = arith.constant dense<0.000000e+00> : vector<24x16xf32>
    %4 = tpu.matmul %3, %0, %cst {dimension_numbers = #tpu.dot_dimension_numbers<[1], [0], [0], [1], [0, 0, 1, 1], [], []>} : vector<24x16xbf16>, vector<16x16xbf16>, vector<24x16xf32> -> vector<24x16xf32>
    %cst_5 = arith.constant dense<0.000000e+00> : vector<24x16xf32>
    %5 = tpu.matmul %3, %1, %cst_5 {dimension_numbers = #tpu.dot_dimension_numbers<[1], [0], [0], [1], [0, 0, 1, 1], [], []>} : vector<24x16xbf16>, vector<16x16xbf16>, vector<24x16xf32> -> vector<24x16xf32>
    %6 = tpu.concatenate %4, %5, %2 in 0 : vector<24x16xf32>, vector<24x16xf32>, vector<24x16xf32> -> vector<72x16xf32>
    %c0_6 = arith.constant 0 : index
    %c0_7 = arith.constant 0 : index
    %c0_8 = arith.constant 0 : index
    %7 = vector.load %arg5[%c0_6, %c0_7, %c0_8] : memref<1x32x72xf32, #tpu.memory_space<vmem>>, vector<1x32x72xf32>
    %8 = vector.shape_cast %7 : vector<1x32x72xf32> to vector<32x72xf32>
    %c0_9 = arith.constant 0 : index
    %c0_10 = arith.constant 0 : index
    %c0_11 = arith.constant 0 : index
    %9 = vector.load %arg6[%c0_9, %c0_10, %c0_11] : memref<1x32x1xf32, #tpu.memory_space<vmem>>, vector<1x32x1xf32>
    %10 = vector.shape_cast %9 : vector<1x32x1xf32> to vector<32x1xf32>
    %c0_12 = arith.constant 0 : index
    %c0_13 = arith.constant 0 : index
    %c0_14 = arith.constant 0 : index
    %11 = vector.load %arg7[%c0_12, %c0_13, %c0_14] : memref<1x24x24xf32, #tpu.memory_space<vmem>>, vector<1x24x24xf32>
    %12 = vector.shape_cast %11 : vector<1x24x24xf32> to vector<24x24xf32>
    %c0_15 = arith.constant 0 : index
    %c0_16 = arith.constant 0 : index
    %c0_17 = arith.constant 0 : index
    %13 = vector.load %arg8[%c0_15, %c0_16, %c0_17] : memref<1x24x1xf32, #tpu.memory_space<vmem>>, vector<1x24x1xf32>
    %14 = vector.shape_cast %13 : vector<1x24x1xf32> to vector<24x1xf32>
    %c0_18 = arith.constant 0 : index
    %c0_19 = arith.constant 0 : index
    %c0_20 = arith.constant 0 : index
    %15 = vector.load %arg9[%c0_18, %c0_19, %c0_20] : memref<1x8x24xf32, #tpu.memory_space<vmem>>, vector<1x8x24xf32>
    %16 = vector.shape_cast %15 : vector<1x8x24xf32> to vector<8x24xf32>
    %c0_21 = arith.constant 0 : index
    %c0_22 = arith.constant 0 : index
    %c0_23 = arith.constant 0 : index
    %17 = vector.load %arg10[%c0_21, %c0_22, %c0_23] : memref<1x8x1xf32, #tpu.memory_space<vmem>>, vector<1x8x1xf32>
    %18 = vector.shape_cast %17 : vector<1x8x1xf32> to vector<8x1xf32>
    %cst_24 = arith.constant dense<0.000000e+00> : vector<32x16xf32>
    %19 = tpu.matmul %8, %6, %cst_24 {dimension_numbers = #tpu.dot_dimension_numbers<[1], [0], [0], [1], [0, 0, 1, 1], [], []>} : vector<32x72xf32>, vector<72x16xf32>, vector<32x16xf32> -> vector<32x16xf32>
    %20 = vector.broadcast %10 : vector<32x1xf32> to vector<32x16xf32>
    %21 = arith.addf %19, %20 : vector<32x16xf32>
    %22 = vector.extract_strided_slice %21 {offsets = [0, 0], sizes = [8, 16], strides = [1, 1]} : vector<32x16xf32> to vector<8x16xf32>
    %23 = vector.extract_strided_slice %21 {offsets = [8, 0], sizes = [24, 16], strides = [1, 1]} : vector<32x16xf32> to vector<24x16xf32>
    %cst_25 = arith.constant 0.000000e+00 : f32
    %24 = vector.broadcast %cst_25 : f32 to vector<24x16xf32>
    %25 = arith.maximumf %23, %24 : vector<24x16xf32>
    %cst_26 = arith.constant dense<0.000000e+00> : vector<24x16xf32>
    %26 = tpu.matmul %12, %25, %cst_26 {dimension_numbers = #tpu.dot_dimension_numbers<[1], [0], [0], [1], [0, 0, 1, 1], [], []>} : vector<24x24xf32>, vector<24x16xf32>, vector<24x16xf32> -> vector<24x16xf32>
    %27 = vector.broadcast %14 : vector<24x1xf32> to vector<24x16xf32>
    %28 = arith.addf %26, %27 : vector<24x16xf32>
    %cst_27 = arith.constant 0.000000e+00 : f32
    %29 = vector.broadcast %cst_27 : f32 to vector<24x16xf32>
    %30 = arith.maximumf %28, %29 : vector<24x16xf32>
    %cst_28 = arith.constant dense<0.000000e+00> : vector<8x16xf32>
    %31 = tpu.matmul %16, %30, %cst_28 {dimension_numbers = #tpu.dot_dimension_numbers<[1], [0], [0], [1], [0, 0, 1, 1], [], []>} : vector<8x24xf32>, vector<24x16xf32>, vector<8x16xf32> -> vector<8x16xf32>
    %32 = arith.addf %22, %31 : vector<8x16xf32>
    %33 = vector.broadcast %18 : vector<8x1xf32> to vector<8x16xf32>
    %34 = arith.addf %32, %33 : vector<8x16xf32>
    %cst_29 = arith.constant dense<0.000000e+00> : vector<8xf32>
    %35 = vector.multi_reduction <add>, %34, %cst_29 [1] : vector<8x16xf32> to vector<8xf32>
    %36 = vector.shape_cast %35 : vector<8xf32> to vector<8x1xf32>
    %cst_30 = arith.constant 1.600000e+01 : f32
    %37 = vector.broadcast %cst_30 : f32 to vector<8x1xf32>
    %38 = arith.divf %36, %37 : vector<8x1xf32>
    %39 = vector.broadcast %38 : vector<8x1xf32> to vector<8x16xf32>
    %40 = arith.subf %34, %39 : vector<8x16xf32>
    %41 = arith.mulf %40, %40 : vector<8x16xf32>
    %cst_31 = arith.constant dense<0.000000e+00> : vector<8xf32>
    %42 = vector.multi_reduction <add>, %41, %cst_31 [1] : vector<8x16xf32> to vector<8xf32>
    %43 = vector.shape_cast %42 : vector<8xf32> to vector<8x1xf32>
    %cst_32 = arith.constant 1.600000e+01 : f32
    %44 = vector.broadcast %cst_32 : f32 to vector<8x1xf32>
    %45 = arith.divf %43, %44 : vector<8x1xf32>
    %cst_33 = arith.constant 9.99999974E-6 : f32
    %46 = vector.broadcast %cst_33 : f32 to vector<8x1xf32>
    %47 = arith.addf %45, %46 : vector<8x1xf32>
    %48 = math.rsqrt %47 : vector<8x1xf32>
    %49 = vector.broadcast %48 : vector<8x1xf32> to vector<8x16xf32>
    %50 = arith.mulf %40, %49 : vector<8x16xf32>
    %c0_34 = arith.constant 0 : index
    %c0_35 = arith.constant 0 : index
    %c0_36 = arith.constant 0 : index
    %51 = vector.load %arg12[%c0_34, %c0_35, %c0_36] : memref<1x48x8xf32, #tpu.memory_space<vmem>>, vector<1x48x8xf32>
    %52 = vector.shape_cast %51 : vector<1x48x8xf32> to vector<48x8xf32>
    %cst_37 = arith.constant dense<0.000000e+00> : vector<48x16xf32>
    %53 = tpu.matmul %52, %50, %cst_37 {dimension_numbers = #tpu.dot_dimension_numbers<[1], [0], [0], [1], [0, 0, 1, 1], [], []>} : vector<48x8xf32>, vector<8x16xf32>, vector<48x16xf32> -> vector<48x16xf32>
    %c0_38 = arith.constant 0 : index
    %c0_39 = arith.constant 0 : index
    %c0_40 = arith.constant 0 : index
    %54 = vector.load %arg13[%c0_38, %c0_39, %c0_40] : memref<1x48x1xf32, #tpu.memory_space<vmem>>, vector<1x48x1xf32>
    %55 = vector.shape_cast %54 : vector<1x48x1xf32> to vector<48x1xf32>
    %56 = vector.broadcast %55 : vector<48x1xf32> to vector<48x16xf32>
    %57 = arith.addf %53, %56 : vector<48x16xf32>
    %c0_41 = arith.constant 0 : index
    %c0_42 = arith.constant 0 : index
    %c0_43 = arith.constant 0 : index
    %58 = vector.load %arg11[%c0_41, %c0_42, %c0_43] : memref<1x48x24xf32, #tpu.memory_space<vmem>>, vector<1x48x24xf32>
    %59 = vector.shape_cast %58 : vector<1x48x24xf32> to vector<48x24xf32>
    %c0_44 = arith.constant 0 : index
    %c0_45 = arith.constant 0 : index
    %c0_46 = arith.constant 0 : index
    %60 = vector.load %arg14[%c0_44, %c0_45, %c0_46] : memref<1x32x32xf32, #tpu.memory_space<vmem>>, vector<1x32x32xf32>
    %61 = vector.shape_cast %60 : vector<1x32x32xf32> to vector<32x32xf32>
    %c0_47 = arith.constant 0 : index
    %c0_48 = arith.constant 0 : index
    %c0_49 = arith.constant 0 : index
    %62 = vector.load %arg15[%c0_47, %c0_48, %c0_49] : memref<1x32x1xf32, #tpu.memory_space<vmem>>, vector<1x32x1xf32>
    %63 = vector.shape_cast %62 : vector<1x32x1xf32> to vector<32x1xf32>
    %c0_50 = arith.constant 0 : index
    %c0_51 = arith.constant 0 : index
    %c0_52 = arith.constant 0 : index
    %64 = vector.load %arg16[%c0_50, %c0_51, %c0_52] : memref<1x16x32xf32, #tpu.memory_space<vmem>>, vector<1x16x32xf32>
    %65 = vector.shape_cast %64 : vector<1x16x32xf32> to vector<16x32xf32>
    %c0_53 = arith.constant 0 : index
    %c0_54 = arith.constant 0 : index
    %c0_55 = arith.constant 0 : index
    %66 = vector.load %arg17[%c0_53, %c0_54, %c0_55] : memref<1x16x1xf32, #tpu.memory_space<vmem>>, vector<1x16x1xf32>
    %67 = vector.shape_cast %66 : vector<1x16x1xf32> to vector<16x1xf32>
    %c0_56 = arith.constant 0 : index
    %c0_57 = arith.constant 0 : index
    %c0_58 = arith.constant 0 : index
    %68 = vector.load %arg1[%c0_56, %c0_57, %c0_58] : memref<1x8x16xf32, #tpu.memory_space<vmem>>, vector<1x8x16xf32>
    %69 = vector.shape_cast %68 : vector<1x8x16xf32> to vector<8x16xf32>
    %c0_i32 = arith.constant 0 : i32
    %70 = arith.truncf %69 : vector<8x16xf32> to vector<8x16xbf16>
    %cst_59 = arith.constant dense<0.000000e+00> : vector<8x16xf32>
    %71 = tpu.matmul %70, %0, %cst_59 {dimension_numbers = #tpu.dot_dimension_numbers<[1], [0], [0], [1], [0, 0, 1, 1], [], []>} : vector<8x16xbf16>, vector<16x16xbf16>, vector<8x16xf32> -> vector<8x16xf32>
    %cst_60 = arith.constant dense<0.000000e+00> : vector<8x16xf32>
    %72 = tpu.matmul %70, %1, %cst_60 {dimension_numbers = #tpu.dot_dimension_numbers<[1], [0], [0], [1], [0, 0, 1, 1], [], []>} : vector<8x16xbf16>, vector<16x16xbf16>, vector<8x16xf32> -> vector<8x16xf32>
    %73 = tpu.concatenate %71, %72, %69 in 0 : vector<8x16xf32>, vector<8x16xf32>, vector<8x16xf32> -> vector<24x16xf32>
    %cst_61 = arith.constant dense<0.000000e+00> : vector<24xf32>
    %74 = vector.multi_reduction <add>, %73, %cst_61 [1] : vector<24x16xf32> to vector<24xf32>
    %75 = vector.shape_cast %74 : vector<24xf32> to vector<24x1xf32>
    %cst_62 = arith.constant 1.600000e+01 : f32
    %76 = vector.broadcast %cst_62 : f32 to vector<24x1xf32>
    %77 = arith.divf %75, %76 : vector<24x1xf32>
    %78 = vector.broadcast %77 : vector<24x1xf32> to vector<24x16xf32>
    %79 = arith.subf %73, %78 : vector<24x16xf32>
    %80 = arith.mulf %79, %79 : vector<24x16xf32>
    %cst_63 = arith.constant dense<0.000000e+00> : vector<24xf32>
    %81 = vector.multi_reduction <add>, %80, %cst_63 [1] : vector<24x16xf32> to vector<24xf32>
    %82 = vector.shape_cast %81 : vector<24xf32> to vector<24x1xf32>
    %cst_64 = arith.constant 1.600000e+01 : f32
    %83 = vector.broadcast %cst_64 : f32 to vector<24x1xf32>
    %84 = arith.divf %82, %83 : vector<24x1xf32>
    %cst_65 = arith.constant 9.99999974E-6 : f32
    %85 = vector.broadcast %cst_65 : f32 to vector<24x1xf32>
    %86 = arith.addf %84, %85 : vector<24x1xf32>
    %87 = math.rsqrt %86 : vector<24x1xf32>
    %88 = vector.broadcast %87 : vector<24x1xf32> to vector<24x16xf32>
    %89 = arith.mulf %79, %88 : vector<24x16xf32>
    %cst_66 = arith.constant dense<0.000000e+00> : vector<48x16xf32>
    %90 = tpu.matmul %59, %89, %cst_66 {dimension_numbers = #tpu.dot_dimension_numbers<[1], [0], [0], [1], [0, 0, 1, 1], [], []>} : vector<48x24xf32>, vector<24x16xf32>, vector<48x16xf32> -> vector<48x16xf32>
    %91 = arith.addf %90, %57 : vector<48x16xf32>
    %92 = vector.extract_strided_slice %91 {offsets = [0, 0], sizes = [16, 16], strides = [1, 1]} : vector<48x16xf32> to vector<16x16xf32>
    %93 = vector.extract_strided_slice %91 {offsets = [16, 0], sizes = [32, 16], strides = [1, 1]} : vector<48x16xf32> to vector<32x16xf32>
    %cst_67 = arith.constant 0.000000e+00 : f32
    %94 = vector.broadcast %cst_67 : f32 to vector<32x16xf32>
    %95 = arith.maximumf %93, %94 : vector<32x16xf32>
    %cst_68 = arith.constant dense<0.000000e+00> : vector<32x16xf32>
    %96 = tpu.matmul %61, %95, %cst_68 {dimension_numbers = #tpu.dot_dimension_numbers<[1], [0], [0], [1], [0, 0, 1, 1], [], []>} : vector<32x32xf32>, vector<32x16xf32>, vector<32x16xf32> -> vector<32x16xf32>
    %97 = vector.broadcast %63 : vector<32x1xf32> to vector<32x16xf32>
    %98 = arith.addf %96, %97 : vector<32x16xf32>
    %cst_69 = arith.constant 0.000000e+00 : f32
    %99 = vector.broadcast %cst_69 : f32 to vector<32x16xf32>
    %100 = arith.maximumf %98, %99 : vector<32x16xf32>
    %cst_70 = arith.constant dense<0.000000e+00> : vector<16x16xf32>
    %101 = tpu.matmul %65, %100, %cst_70 {dimension_numbers = #tpu.dot_dimension_numbers<[1], [0], [0], [1], [0, 0, 1, 1], [], []>} : vector<16x32xf32>, vector<32x16xf32>, vector<16x16xf32> -> vector<16x16xf32>
    %102 = arith.addf %92, %101 : vector<16x16xf32>
    %103 = vector.broadcast %67 : vector<16x1xf32> to vector<16x16xf32>
    %104 = arith.addf %102, %103 : vector<16x16xf32>
    %105 = vector.extract_strided_slice %104 {offsets = [0, 0], sizes = [8, 16], strides = [1, 1]} : vector<16x16xf32> to vector<8x16xf32>
    %106 = vector.extract_strided_slice %104 {offsets = [8, 0], sizes = [8, 16], strides = [1, 1]} : vector<16x16xf32> to vector<8x16xf32>
    %cst_71 = arith.constant 6.000000e+00 : f32
    %107 = vector.broadcast %cst_71 : f32 to vector<8x16xf32>
    %108 = arith.divf %106, %107 : vector<8x16xf32>
    %cst_72 = arith.constant 5.000000e-01 : f32
    %109 = vector.broadcast %cst_72 : f32 to vector<8x16xf32>
    %110 = arith.addf %108, %109 : vector<8x16xf32>
    %cst_73 = arith.constant 0.000000e+00 : f32
    %cst_74 = arith.constant 1.000000e+00 : f32
    %111 = vector.broadcast %cst_73 : f32 to vector<8x16xf32>
    %112 = arith.maximumf %111, %110 : vector<8x16xf32>
    %113 = vector.broadcast %cst_74 : f32 to vector<8x16xf32>
    %114 = arith.minimumf %113, %112 : vector<8x16xf32>
    %115 = arith.mulf %105, %114 : vector<8x16xf32>
    %cst_75 = arith.constant 1.000000e-01 : f32
    %116 = vector.broadcast %cst_75 : f32 to vector<8x16xf32>
    %117 = arith.mulf %116, %115 : vector<8x16xf32>
    %118 = arith.addf %69, %117 : vector<8x16xf32>
    %c1_i32 = arith.constant 1 : i32
    %119 = arith.truncf %118 : vector<8x16xf32> to vector<8x16xbf16>
    %cst_76 = arith.constant dense<0.000000e+00> : vector<8x16xf32>
    %120 = tpu.matmul %119, %0, %cst_76 {dimension_numbers = #tpu.dot_dimension_numbers<[1], [0], [0], [1], [0, 0, 1, 1], [], []>} : vector<8x16xbf16>, vector<16x16xbf16>, vector<8x16xf32> -> vector<8x16xf32>
    %cst_77 = arith.constant dense<0.000000e+00> : vector<8x16xf32>
    %121 = tpu.matmul %119, %1, %cst_77 {dimension_numbers = #tpu.dot_dimension_numbers<[1], [0], [0], [1], [0, 0, 1, 1], [], []>} : vector<8x16xbf16>, vector<16x16xbf16>, vector<8x16xf32> -> vector<8x16xf32>
    %122 = tpu.concatenate %120, %121, %118 in 0 : vector<8x16xf32>, vector<8x16xf32>, vector<8x16xf32> -> vector<24x16xf32>
    %cst_78 = arith.constant dense<0.000000e+00> : vector<24xf32>
    %123 = vector.multi_reduction <add>, %122, %cst_78 [1] : vector<24x16xf32> to vector<24xf32>
    %124 = vector.shape_cast %123 : vector<24xf32> to vector<24x1xf32>
    %cst_79 = arith.constant 1.600000e+01 : f32
    %125 = vector.broadcast %cst_79 : f32 to vector<24x1xf32>
    %126 = arith.divf %124, %125 : vector<24x1xf32>
    %127 = vector.broadcast %126 : vector<24x1xf32> to vector<24x16xf32>
    %128 = arith.subf %122, %127 : vector<24x16xf32>
    %129 = arith.mulf %128, %128 : vector<24x16xf32>
    %cst_80 = arith.constant dense<0.000000e+00> : vector<24xf32>
    %130 = vector.multi_reduction <add>, %129, %cst_80 [1] : vector<24x16xf32> to vector<24xf32>
    %131 = vector.shape_cast %130 : vector<24xf32> to vector<24x1xf32>
    %cst_81 = arith.constant 1.600000e+01 : f32
    %132 = vector.broadcast %cst_81 : f32 to vector<24x1xf32>
    %133 = arith.divf %131, %132 : vector<24x1xf32>
    %cst_82 = arith.constant 9.99999974E-6 : f32
    %134 = vector.broadcast %cst_82 : f32 to vector<24x1xf32>
    %135 = arith.addf %133, %134 : vector<24x1xf32>
    %136 = math.rsqrt %135 : vector<24x1xf32>
    %137 = vector.broadcast %136 : vector<24x1xf32> to vector<24x16xf32>
    %138 = arith.mulf %128, %137 : vector<24x16xf32>
    %cst_83 = arith.constant dense<0.000000e+00> : vector<48x16xf32>
    %139 = tpu.matmul %59, %138, %cst_83 {dimension_numbers = #tpu.dot_dimension_numbers<[1], [0], [0], [1], [0, 0, 1, 1], [], []>} : vector<48x24xf32>, vector<24x16xf32>, vector<48x16xf32> -> vector<48x16xf32>
    %140 = arith.addf %139, %57 : vector<48x16xf32>
    %141 = vector.extract_strided_slice %140 {offsets = [0, 0], sizes = [16, 16], strides = [1, 1]} : vector<48x16xf32> to vector<16x16xf32>
    %142 = vector.extract_strided_slice %140 {offsets = [16, 0], sizes = [32, 16], strides = [1, 1]} : vector<48x16xf32> to vector<32x16xf32>
    %cst_84 = arith.constant 0.000000e+00 : f32
    %143 = vector.broadcast %cst_84 : f32 to vector<32x16xf32>
    %144 = arith.maximumf %142, %143 : vector<32x16xf32>
    %cst_85 = arith.constant dense<0.000000e+00> : vector<32x16xf32>
    %145 = tpu.matmul %61, %144, %cst_85 {dimension_numbers = #tpu.dot_dimension_numbers<[1], [0], [0], [1], [0, 0, 1, 1], [], []>} : vector<32x32xf32>, vector<32x16xf32>, vector<32x16xf32> -> vector<32x16xf32>
    %146 = vector.broadcast %63 : vector<32x1xf32> to vector<32x16xf32>
    %147 = arith.addf %145, %146 : vector<32x16xf32>
    %cst_86 = arith.constant 0.000000e+00 : f32
    %148 = vector.broadcast %cst_86 : f32 to vector<32x16xf32>
    %149 = arith.maximumf %147, %148 : vector<32x16xf32>
    %cst_87 = arith.constant dense<0.000000e+00> : vector<16x16xf32>
    %150 = tpu.matmul %65, %149, %cst_87 {dimension_numbers = #tpu.dot_dimension_numbers<[1], [0], [0], [1], [0, 0, 1, 1], [], []>} : vector<16x32xf32>, vector<32x16xf32>, vector<16x16xf32> -> vector<16x16xf32>
    %151 = arith.addf %141, %150 : vector<16x16xf32>
    %152 = vector.broadcast %67 : vector<16x1xf32> to vector<16x16xf32>
    %153 = arith.addf %151, %152 : vector<16x16xf32>
    %154 = vector.extract_strided_slice %153 {offsets = [0, 0], sizes = [8, 16], strides = [1, 1]} : vector<16x16xf32> to vector<8x16xf32>
    %155 = vector.extract_strided_slice %153 {offsets = [8, 0], sizes = [8, 16], strides = [1, 1]} : vector<16x16xf32> to vector<8x16xf32>
    %cst_88 = arith.constant 6.000000e+00 : f32
    %156 = vector.broadcast %cst_88 : f32 to vector<8x16xf32>
    %157 = arith.divf %155, %156 : vector<8x16xf32>
    %cst_89 = arith.constant 5.000000e-01 : f32
    %158 = vector.broadcast %cst_89 : f32 to vector<8x16xf32>
    %159 = arith.addf %157, %158 : vector<8x16xf32>
    %cst_90 = arith.constant 0.000000e+00 : f32
    %cst_91 = arith.constant 1.000000e+00 : f32
    %160 = vector.broadcast %cst_90 : f32 to vector<8x16xf32>
    %161 = arith.maximumf %160, %159 : vector<8x16xf32>
    %162 = vector.broadcast %cst_91 : f32 to vector<8x16xf32>
    %163 = arith.minimumf %162, %161 : vector<8x16xf32>
    %164 = arith.mulf %154, %163 : vector<8x16xf32>
    %cst_92 = arith.constant 1.000000e-01 : f32
    %165 = vector.broadcast %cst_92 : f32 to vector<8x16xf32>
    %166 = arith.mulf %165, %164 : vector<8x16xf32>
    %167 = arith.addf %118, %166 : vector<8x16xf32>
    %168 = arith.truncf %167 : vector<8x16xf32> to vector<8x16xbf16>
    %c0_93 = arith.constant 0 : index
    %c0_94 = arith.constant 0 : index
    %169 = vector.load %arg18[%c0_93, %c0_94] : memref<16x64xbf16, #tpu.memory_space<vmem>>, vector<16x64xbf16>
    %cst_95 = arith.constant dense<0.000000e+00> : vector<8x64xf32>
    %170 = tpu.matmul %168, %169, %cst_95 {dimension_numbers = #tpu.dot_dimension_numbers<[1], [0], [0], [1], [0, 0, 1, 1], [], []>} : vector<8x16xbf16>, vector<16x64xbf16>, vector<8x64xf32> -> vector<8x64xf32>
    %c0_96 = arith.constant 0 : index
    %c0_97 = arith.constant 0 : index
    %c0_98 = arith.constant 0 : index
    %171 = vector.load %arg19[%c0_96, %c0_97, %c0_98] : memref<1x8x64xf32, #tpu.memory_space<vmem>>, vector<1x8x64xf32>
    %172 = vector.shape_cast %171 : vector<1x8x64xf32> to vector<8x64xf32>
    %173 = vector.shape_cast %170 : vector<8x64xf32> to vector<1x8x64xf32>
    tpu.vector_store %arg19[%c0_96, %c0_97, %c0_98], %173 {strides = array<i32>} : memref<1x8x64xf32, #tpu.memory_space<vmem>>, vector<1x8x64xf32>,
    return
  }
  func.func @transform_0(%arg0: i32) -> (i32, i32, i32) {
    %c0_i32 = arith.constant 0 : i32
    %c0_i32_0 = arith.constant 0 : i32
    %c0_i32_1 = arith.constant 0 : i32
    return %arg0, %c0_i32, %c0_i32_0 : i32, i32, i32
  }
  func.func @transform_1(%arg0: i32) -> (i32, i32) {
    %c0_i32 = arith.constant 0 : i32
    %c0_i32_0 = arith.constant 0 : i32
    %c0_i32_1 = arith.constant 0 : i32
    return %c0_i32, %c0_i32_0 : i32, i32
  }
  func.func @transform_2(%arg0: i32) -> (i32, i32) {
    %c0_i32 = arith.constant 0 : i32
    %c0_i32_0 = arith.constant 0 : i32
    %c0_i32_1 = arith.constant 0 : i32
    return %c0_i32, %c0_i32_0 : i32, i32
  }
  func.func @transform_3(%arg0: i32) -> (i32, i32) {
    %c0_i32 = arith.constant 0 : i32
    %c0_i32_0 = arith.constant 0 : i32
    %c0_i32_1 = arith.constant 0 : i32
    return %c0_i32, %c0_i32_0 : i32, i32
  }
  func.func @transform_4(%arg0: i32) -> (i32, i32, i32) {
    %c0_i32 = arith.constant 0 : i32
    %c0_i32_0 = arith.constant 0 : i32
    %c0_i32_1 = arith.constant 0 : i32
    return %arg0, %c0_i32, %c0_i32_0 : i32, i32, i32
  }
  func.func @transform_5(%arg0: i32) -> (i32, i32, i32) {
    %c0_i32 = arith.constant 0 : i32
    %c0_i32_0 = arith.constant 0 : i32
    %c0_i32_1 = arith.constant 0 : i32
    return %arg0, %c0_i32, %c0_i32_0 : i32, i32, i32
  }
  func.func @transform_6(%arg0: i32) -> (i32, i32, i32) {
    %c0_i32 = arith.constant 0 : i32
    %c0_i32_0 = arith.constant 0 : i32
    %c0_i32_1 = arith.constant 0 : i32
    return %arg0, %c0_i32, %c0_i32_0 : i32, i32, i32
  }
  func.func @transform_7(%arg0: i32) -> (i32, i32, i32) {
    %c0_i32 = arith.constant 0 : i32
    %c0_i32_0 = arith.constant 0 : i32
    %c0_i32_1 = arith.constant 0 : i32
    return %arg0, %c0_i32, %c0_i32_0 : i32, i32, i32
  }
  func.func @transform_8(%arg0: i32) -> (i32, i32, i32) {
    %c0_i32 = arith.constant 0 : i32
    %c0_i32_0 = arith.constant 0 : i32
    %c0_i32_1 = arith.constant 0 : i32
    return %arg0, %c0_i32, %c0_i32_0 : i32, i32, i32
  }
  func.func @transform_9(%arg0: i32) -> (i32, i32, i32) {
    %c0_i32 = arith.constant 0 : i32
    %c0_i32_0 = arith.constant 0 : i32
    %c0_i32_1 = arith.constant 0 : i32
    return %arg0, %c0_i32, %c0_i32_0 : i32, i32, i32
  }
  func.func @transform_10(%arg0: i32) -> (i32, i32, i32) {
    %c0_i32 = arith.constant 0 : i32
    %c0_i32_0 = arith.constant 0 : i32
    %c0_i32_1 = arith.constant 0 : i32
    return %arg0, %c0_i32, %c0_i32_0 : i32, i32, i32
  }
  func.func @transform_11(%arg0: i32) -> (i32, i32, i32) {
    %c0_i32 = arith.constant 0 : i32
    %c0_i32_0 = arith.constant 0 : i32
    %c0_i32_1 = arith.constant 0 : i32
    return %arg0, %c0_i32, %c0_i32_0 : i32, i32, i32
  }
  func.func @transform_12(%arg0: i32) -> (i32, i32, i32) {
    %c0_i32 = arith.constant 0 : i32
    %c0_i32_0 = arith.constant 0 : i32
    %c0_i32_1 = arith.constant 0 : i32
    return %arg0, %c0_i32, %c0_i32_0 : i32, i32, i32
  }
  func.func @transform_13(%arg0: i32) -> (i32, i32, i32) {
    %c0_i32 = arith.constant 0 : i32
    %c0_i32_0 = arith.constant 0 : i32
    %c0_i32_1 = arith.constant 0 : i32
    return %arg0, %c0_i32, %c0_i32_0 : i32, i32, i32
  }
  func.func @transform_14(%arg0: i32) -> (i32, i32, i32) {
    %c0_i32 = arith.constant 0 : i32
    %c0_i32_0 = arith.constant 0 : i32
    %c0_i32_1 = arith.constant 0 : i32
    return %arg0, %c0_i32, %c0_i32_0 : i32, i32, i32
  }
  func.func @transform_15(%arg0: i32) -> (i32, i32, i32) {
    %c0_i32 = arith.constant 0 : i32
    %c0_i32_0 = arith.constant 0 : i32
    %c0_i32_1 = arith.constant 0 : i32
    return %arg0, %c0_i32, %c0_i32_0 : i32, i32, i32
  }
  func.func @transform_16(%arg0: i32) -> (i32, i32, i32) {
    %c0_i32 = arith.constant 0 : i32
    %c0_i32_0 = arith.constant 0 : i32
    %c0_i32_1 = arith.constant 0 : i32
    return %arg0, %c0_i32, %c0_i32_0 : i32, i32, i32
  }
  func.func @transform_17(%arg0: i32) -> (i32, i32) {
    %c0_i32 = arith.constant 0 : i32
    %c0_i32_0 = arith.constant 0 : i32
    %c0_i32_1 = arith.constant 0 : i32
    return %c0_i32, %c0_i32_0 : i32, i32
  }
  func.func @transform_18(%arg0: i32) -> (i32, i32, i32) {
    %c0_i32 = arith.constant 0 : i32
    %c0_i32_0 = arith.constant 0 : i32
    %c0_i32_1 = arith.constant 0 : i32
    return %arg0, %c0_i32, %c0_i32_0 : i32, i32, i32
  }
}

</mosaic_0001>

<bundles_post_ra>
// kernel: tpu_custom_call.1
= control target key start
LH: loop header
LB: loop body
LE: loop exit
PB: predicated region body
PF: predicated region fallthrough
CT: control target
= control target key end

     0   :  { %s3707_s0 = inlined_call_operand.vmem [shape: f32[2,8,16], index: 0, kind: input, shape index: {}]   ;;  %s3708_s1 = inlined_call_operand.vmem [shape: f32[24,16], index: 1, kind: input, shape index: {}]   ;;  %s3709_s2 = inlined_call_operand.vmem [shape: bf16[16,16], index: 2, kind: input, shape index: {}]   ;;  %s3710_s3 = inlined_call_operand.vmem [shape: bf16[16,16], index: 3, kind: input, shape index: {}]   ;;  %s3711_s4 = inlined_call_operand.vmem [shape: f32[2,32,72], index: 4, kind: input, shape index: {}]   ;;  %s3712_s5 = inlined_call_operand.vmem [shape: f32[2,32,1], index: 5, kind: input, shape index: {}]   ;;  %s3713_s6 = inlined_call_operand.vmem [shape: f32[2,24,24], index: 6, kind: input, shape index: {}]   ;;  %s3714_s7 = inlined_call_operand.vmem [shape: f32[2,24,1], index: 7, kind: input, shape index: {}]   ;;  %s3715_s8 = inlined_call_operand.vmem [shape: f32[2,8,24], index: 8, kind: input, shape index: {}]   ;;  %s3716_s9 = inlined_call_operand.vmem [shape: f32[2,8,1], index: 9, kind: input, shape index: {}]   ;;  %s3717_s10 = inlined_call_operand.vmem [shape: f32[2,48,24], index: 10, kind: input, shape index: {}]   ;;  %s3718_s11 = inlined_call_operand.vmem [shape: f32[2,48,8], index: 11, kind: input, shape index: {}]   ;;  %s3719_s12 = inlined_call_operand.vmem [shape: f32[2,48,1], index: 12, kind: input, shape index: {}]   ;;  %s3720_s13 = inlined_call_operand.vmem [shape: f32[2,32,32], index: 13, kind: input, shape index: {}]   ;;  %s3721_s14 = inlined_call_operand.vmem [shape: f32[2,32,1], index: 14, kind: input, shape index: {}]   ;;  %s3722_s15 = inlined_call_operand.vmem [shape: f32[2,16,32], index: 15, kind: input, shape index: {}]   ;;  %s3723_s16 = inlined_call_operand.vmem [shape: f32[2,16,1], index: 16, kind: input, shape index: {}]   ;;  %s3724_s17 = inlined_call_operand.vmem [shape: bf16[16,64], index: 17, kind: input, shape index: {}]   ;;  %s3725_s18 = inlined_call_operand.hbm [shape: f32[2,8,64], index: 18, kind: output, shape index: {}]  }
   0x1   :  { %3733 = sst [smem:[#allocation10_spill]] %s3707_s0 }
   0x2   :  { %3734 = sst [smem:[#allocation11_spill]] %s3708_s1 }
   0x3   :  { %3735 = sst [smem:[#allocation12_spill]] %s3709_s2 }
   0x4   :  { %3736 = sst [smem:[#allocation13_spill]] %s3710_s3 }
   0x5   :  { %23 = vsyncpa [#allocation3], 0 }
   0x6   :  { %25 = vsyncpa [#allocation3 + $0x1], 0  ;;  %s3265_s27 = smov 0   ;;  %s3267_s28 = smov 0  }
   0x7   :  { %s3269_s29 = smov 0   ;;  %s3271_s30 = smov 0  }
   0x8 LB: > { %3737 = sst [smem:[#allocation5_spill]] %s3151_s27  ;;  %s3286_s0 = sadd.s32 4294967295, %s3163_s30   ;;  %s3163_s30 = sphi %s3271_s30, %s3751_s30   ;;  %s3159_s29 = sphi %s3269_s29, %s3753_s29   ;;  %s3155_s28 = sphi %s3267_s28, %s3755_s28   ;;  %s3151_s27 = sphi %s3265_s27, %s3754_s27  }
   0x9   : > { %3738 = sst [smem:[#allocation6_spill]] %s3159_s29  ;;  %s2609_s19 = sadd.s32 4294967294, %s3163_s30  }
   0xa   : > { %s3290_s1 = sadd.s32 1, %s3163_s30   ;;  %s486_s20 = sadd.s32 1, %s3159_s29 }
   0xb   : > { %3739 = sst [smem:[#allocation7_spill]] %s3290_s1  ;;  %s483_s21 = ssub.s32 %s3163_s30, %s3290_s1 }
   0xc   : > { %p496_p0 = scmp.ne.s32.totalorder %s3159_s29, %s3155_s28  ;;  %p484_p1 = scmp.eq.s32.totalorder %s483_s21, 0 }
   0xd   : > { %p497_p2 = scmp.eq.s32.totalorder %s3286_s0, 1  ;;  %p502_p3 = scmp.ne.s32.totalorder %s3155_s28, %s3151_s27 }
   0xe   : > { %p503_p4 = scmp.eq.s32.totalorder %s2609_s19, 1  ;;  %p2612_p7 = scmp.ge.s32.totalorder %s3163_s30, 1 }
   0xf   : > { %s3301_s22 = scalar_select %p484_p1, %s3159_s29, %s486_s20  }
  0x10   : > { %p3303_p5 = por %p497_p2, %p496_p0  ;;  %p3307_p6 = por %p503_p4, %p502_p3 }
  0x11   : > { %3740 = sst [smem:[#allocation8_spill]] %s3301_s22  ;;  %p642_p8 = scmp.lt.s32.totalorder %s3163_s30, 3 }
  0x12   : > { %s3742_s23 = scalar_select %p3307_p6, 1, 0 }
  0x13   : > { %p643_p9 = pnand %p2612_p7, %p642_p8 }
  0x14   : > { %3743 = sst [smem:[#allocation9_spill]] %s3742_s23  ;;  %s3744_s26 = sld [smem:[#allocation12_spill]] (!%p643_p9)  ;;  %vm841_vm0 = vcmask (!%p643_p9), 130048   ;;  %vm986_vm1 = vcmask (!%p643_p9), 588800   ;;  %v3165_v8 = vmov (!%p643_p9), 0   ;;  %v3166_v32 = vmov (!%p643_p9), 0.0|0.0  }
  0x15   : > { %646 = sbr.rel (%p643_p9) target bundleno = 3399 (0xd47), region = 92  ;;  %s3745_s3 = sld [smem:[#allocation13_spill]] (!%p643_p9)  ;;  %3082 = vset.pattern.permute.xlu0 (!%p643_p9), %v3165_v8  ;;  %3083 = vset.pattern.permute.xlu1 (!%p643_p9), %v3165_v8  ;;  %v3167_v33 = vmov (!%p643_p9), 0.0   ;;  %vm3168_vm2 = vmmov (!%p643_p9), 0   ;;  %vm1102_vm3 = vcmask (!%p643_p9), 195584   ;;  %vm1331_vm4 = vcmask (!%p643_p9), 64512  }
  0x16   : > { %s3746_s29 = sld [smem:[#allocation11_spill]] (!%p643_p9)  ;;  %p758_p10 = scmp.lt.s32.totalorder (!%p643_p9), %s3286_s0, 1  ;;  %vm1724_vm5 = vcmask (!%p643_p9), 261120   ;;  %vm2378_vm6 = vcmask (!%p643_p9), 523264  }
  0x17   : > { %s3748_s25 = sld [smem:[#allocation10_spill]] (!%p643_p9) }
  0x1a   : > { %v3316_v0 = vld [vmem:[%s3744_s26] sm:$0xff] (!%p643_p9)  }
  0x1b   : > { %v3321_v1 = vld [vmem:[%s3745_s3] sm:$0xff] (!%p643_p9)   ;;  %2786 = vmatprep.subr.bf16.mxu0 (!%p643_p9), %v3316_v0 }
  0x1c   : > { %s3747_s1 = smov %s3746_s29  ;;  %v830_v2 = vld [vmem:[%s3746_s29] sm:$0xff]  ;;  %2792 = vmatprep.subr.bf16.mxu1 %v3321_v1  ;;  %2787 = vmatpush3.bf16.msra.mxu0 %v3316_v0 }
  0x1d   : > { %v831_v3 = vld [vmem:[%s3747_s1 + $0x8] sm:$0xff]  ;;  %v832_v4 = vld [vmem:[%s3747_s1 + $0x10] sm:$0xff]  ;;  %2793 = vmatpush3.bf16.msra.mxu1 %v3321_v1  ;;  %s3342_s27 = scalar_select %p758_p10, %s3286_s0, 1 }
  0x1e   : > { %v833_v5 = vpack.c.bf16 %v831_v3, %v830_v2  ;;  %v834_v6 = vpack.c.bf16 %v832_v4, %v832_v4  ;;  %2983 = vmatprep.subr.bf16.mxu1 %v3166_v32 }
  0x1f   : > { %s3345_s29 = sshll.u32 %s3342_s27, 5  ;;  %s3037_s24 = smul.u32 24, %s3342_s27 }
  0x20   : > { %2788 = vmatprep.mubr.msk.bf16.mxu0 %vm841_vm0, %v833_v5  ;;  %2794 = vmatprep.mubr.msk.bf16.mxu1 %vm841_vm0, %v833_v5  ;;  %s3351_s26 = scalar_lea.vmem %s3711_s4, %s3345_s29  ;;  %s771_s21 = scalar_lea.vmem %s3712_s5, %s3345_s29 }
  0x21   : > { %2789 = vmatmul.mubr.msk.bf16.vlgmr.msra.gmra.mrb[0].mxu0 %vm841_vm0, %v834_v6  ;;  %2795 = vmatmul.mubr.msk.bf16.vlgmr.msra.gmra.mrb[0].mxu1 %vm841_vm0, %v834_v6  ;;  %v950_v7 = vld [vmem:[%s3351_s26] sm:$0xff]  ;;  %v955_v9 = vld [vmem:[%s771_s21 + $0x8] sm:$0xff]  ;;  %v957_v10 = vld [vmem:[%s771_s21 + $0x18] sm:$0xff]  ;;  %s781_s23 = scalar_lea.vmem %s3714_s7, %s3037_s24  ;;  %s3366_s1 = sshll.u32 %s3342_s27, 3 }
  0x22   : > { %2816 = vmatprep.mubr.msk.f32.mxu0 %vm986_vm1, %v950_v7  ;;  %973 = vperm.xlu0 %3082, %v955_v9   ;;  %v956_v11 = vld [vmem:[%s771_s21 + $0x10] sm:$0xff]  ;;  %v961_v12 = vld [vmem:[%s781_s23] sm:$0xff]  ;;  %v962_v13 = vld [vmem:[%s781_s23 + $0x8] sm:$0xff]  ;;  %s789_s3 = scalar_lea.vmem %s3716_s9, %s3366_s1  ;;  %s761_s22 = scalar_lea.vmem %s3748_s25, %s3366_s1 }
  0x23   : > { %983 = vperm.xlu1 %3083, %v957_v10   ;;  %v963_v14 = vld [vmem:[%s781_s23 + $0x10] sm:$0xff]  ;;  %v954_v15 = vld [vmem:[%s771_s21] sm:$0xff]  ;;  %v951_v28 = vld [vmem:[%s3351_s26 + $0x8] sm:$0xff]  ;;  %2828 = vmatprep.mubr.msk.f32.mxu1 %vm3168_vm2, %v3167_v33  ;;  %s776_s19 = scalar_lea.vmem %s3713_s6, %s3037_s24  ;;  %s2692_s21 = sshll.u32 %s3342_s27, 4 }
  0x24   : > { %v965_v16 = vld [vmem:[%s789_s3] sm:$0xff]  ;;  %v952_v29 = vld [vmem:[%s3351_s26 + $0x10] sm:$0xff]  ;;  %v953_v30 = vld [vmem:[%s3351_s26 + $0x18] sm:$0xff]  ;;  %s785_s3 = scalar_lea.vmem %s3715_s8, %s3366_s1  ;;  %s3446_s1 = smul.u32 48, %s3342_s27 }
  0x25   : > { %v3382_v31 = vld [vmem:[%s761_s22] sm:$0xff]  ;;  %v959_v50 = vld [vmem:[%s776_s19 + $0x8] sm:$0xff]  ;;  %v960_v51 = vld [vmem:[%s776_s19 + $0x10] sm:$0xff]  ;;  %s824_s23 = scalar_lea.vmem %s3723_s16, %s2692_s21  ;;  %s819_s26 = scalar_lea.vmem %s3722_s15, %s2692_s21 }
  0x26   : > { %978 = vperm.xlu0 %3082, %v956_v11   ;;  %v1464_v34 = vpack.c.bf16 %v3382_v31, %v3382_v31  ;;  %v958_v49 = vld [vmem:[%s776_s19] sm:$0xff]  ;;  %s804_s22 = scalar_lea.vmem %s3719_s12, %s3446_s1  ;;  %s814_s19 = scalar_lea.vmem %s3721_s14, %s3345_s29 }
  0x27   : > { %1089 = vperm.xlu1 %3083, %v961_v12   ;;  %v964_v10 = vld [vmem:[%s785_s3] sm:$0xff]  ;;  %s3460_s3 = scalar_lea.vmem %s3718_s11, %s3446_s1  ;;  %s794_s24 = scalar_lea.vmem %s3717_s10, %s3446_s1 }
  0x2a   : > { %1094 = vperm.xlu0 %3082, %v962_v13  }
  0x2b   : > { %1099 = vperm.xlu1 %3083, %v963_v14  }
  0x2e   : > { %968 = vperm.xlu0 %3082, %v954_v15  }
  0x2f   : > { %1271 = vperm.xlu1 %3083, %v965_v16  }
  0xa1   : > { %v974_v35 = vpop.permute.xlu0 %973 }
  0xa2   : > { %v984_v45 = vpop.permute.xlu1 %983 }
  0xa5   : > { %v979_v40 = vpop.permute.xlu0 %978 }
  0xa6   : > { %v1090_v59 = vpop.permute.xlu1 %1089 }
  0xa9   : > { %v1095_v61 = vpop.permute.xlu0 %1094 }
  0xad   : > { %v969_v16 = vpop.permute.xlu0 %968 }
  0xf4   : > { %v2790_v17 = vpop.f32.mrb[0].mxu0  ;;  %v2796_v18 = vpop.f32.mrb[0].mxu1 }
  0xf5   : > { %v882_v19 = vpop.f32.mrb[1].mxu0  ;;  %v936_v20 = vpop.f32.mrb[1].mxu1 }
  0xf6   : > { %v2791_v21 = vpop.f32.mrb[2].mxu0  ;;  %v2971_v22 = vpack.c.bf16 %v936_v20, %v2790_v17  ;;  %v2797_v24 = vpop.f32.mrb[2].mxu1 }
  0xf7   : > { %v885_v23 = vpop.f32.mrb[3].mxu0  ;;  %v939_v26 = vpop.f32.mrb[3].mxu1 }
  0xf8   : > { %v2967_v25 = vpack.c.bf16 %v885_v23, %v882_v19  ;;  %v2975_v27 = vpack.c.bf16 %v2796_v18, %v939_v26 }
  0xfa   : > { %2968 = vmatprep.subr.bf16.mxu0 %v2967_v25 }
  0xfb   : > { %2970 = vmatpush3.bf16.msra.mxu0 %v2967_v25 }
  0xfc   : > { %2972 = vmatprep.subr.bf16.mxu0 %v2971_v22 }
  0xff   : > { %2974 = vmatpush3.bf16.msra.mxu0 %v2971_v22 }
 0x100   : > { %2976 = vmatprep.subr.bf16.mxu0 %v2975_v27 }
 0x103   : > { %2978 = vmatpush3.bf16.msra.mxu0 %v2975_v27 }
 0x104   : > { %2980 = vmatprep.subr.bf16.mxu0 %v833_v5 }
 0x107   : > { %2982 = vmatpush3.bf16.msra.mxu0 %v833_v5  ;;  %v1100_v5 = vpop.permute.xlu1 %1099 }
 0x108   : > { %2814 = vmatprep.subr.mxu0 %v832_v4 }
 0x10b   : > { %2815 = vmatpush3.msra.mxu0 %v832_v4  ;;  %v1272_v17 = vpop.permute.xlu1 %1271 }
 0x10c   : > { %2817 = vmatmul.mubr.msk.f32.vlgmr.msra.gmra.mrb[4].mxu0 %vm986_vm1, %v951_v28  ;;  %2857 = vmatprep.subr.bf16.mxu0 %v3167_v33  ;;  %v1554_v28 = vsel %vm841_vm0, %v3382_v31, 0.0 }
 0x10d   : > { %2819 = vmatprep.mubr.msk.f32.mxu0 %vm986_vm1, %v952_v29  ;;  %2858 = vmatpush3.bf16.msra.mxu0 %v3316_v0 }
 0x10e   : > { %2863 = vmatprep.subr.bf16.mxu0 %v3167_v33 }
 0x110   : > { %2820 = vmatmul.mubr.msk.f32.gmra.mrb[6].mxu0 %vm986_vm1, %v953_v30 }
 0x111   : > { %2859 = vmatprep.mubr.msk.bf16.mxu0 %vm3168_vm2, %v3167_v33 }
 0x114   : > { %2860 = vmatmul.mubr.msk.bf16.vlgmr.msra.gmra.mrb[8].mxu0 %vm841_vm0, %v1464_v34 }
 0x115   : > { %2864 = vmatpush3.bf16.msra.mxu0 %v3321_v1  ;;  %2865 = vmatprep.mubr.msk.bf16.mxu0 %vm3168_vm2, %v3167_v33 }
 0x11c   : > { %2866 = vmatmul.mubr.msk.bf16.vlgmr.msra.gmra.mrb[12].mxu0 %vm841_vm0, %v1464_v34 }
 0x1df   : > { %v2818_v36 = vpop.f32.mrb[4].mxu0 }
 0x1e0   : > { %v1065_v37 = vpop.f32.mrb[5].mxu0  ;;  %v1071_v38 = vadd.f32 %v2818_v36, %v974_v35 }
 0x1e1   : > { %v1066_v18 = vadd.f32 %v1065_v37, %v969_v16 }
 0x1e2   : > { %v1084_v43 = vmax.f32 %v1071_v38, 0.0 }
 0x1e3   : > { %v2821_v39 = vpop.f32.mrb[6].mxu0 }
 0x1e4   : > { %v1075_v41 = vpop.f32.mrb[7].mxu0  ;;  %v1081_v46 = vadd.f32 %v2821_v39, %v984_v45 }
 0x1e5   : > { %v1076_v42 = vadd.f32 %v1075_v41, %v979_v40 }
 0x1e6   : > { %v1086_v48 = vmax.f32 %v1081_v46, 0.0 }
 0x1e7   : > { %v1085_v44 = vmax.f32 %v1076_v42, 0.0  ;;  %v1502_v52 = vpop.f32.mrb[8].mxu0 }
 0x1e8   : > { %v1548_v53 = vsel %vm841_vm0, %v1502_v52, 0.0  ;;  %v2861_v54 = vpop.f32.mrb[9].mxu0 }
 0x1e9   : > { %v2984_v47 = vpack.c.bf16 %v1085_v44, %v1084_v43  ;;  %1549 = vadd.xlane.f32.xlu1 %v1548_v53  ;;  %v1505_v55 = vpop.f32.mrb[10].mxu0  ;;  %v1455_v53 = vld [vmem:[%s814_s19] sm:$0xff] }
 0x1ea   : > { %v2862_v56 = vpop.f32.mrb[11].mxu0  ;;  %v1289_v54 = vld [vmem:[%s3460_s3] sm:$0xff]  ;;  %v1458_v55 = vld [vmem:[%s814_s19 + $0x18] sm:$0xff] }
 0x1eb   : > { %2985 = vmatpush3.bf16.msra.mxu1 %v2984_v47  ;;  %v1457_v56 = vld [vmem:[%s814_s19 + $0x10] sm:$0xff] }
 0x1ec   : > { %2826 = vmatprep.subr.mxu1 %v3167_v33 }
 0x1ef   : > { %2827 = vmatpush3.msra.mxu1 %v1086_v48  ;;  %v1542_v12 = vpop.f32.mrb[12].mxu0  ;;  %v1297_v48 = vld [vmem:[%s804_s22 + $0x10] sm:$0xff] }
 0x1f0   : > { %2829 = vmatmul.mubr.msk.f32.vlgmr.msra.gmra.mrb[4].mxu1 %vm1102_vm3, %v958_v49  ;;  %2986 = vmatprep.subr.bf16.mxu1 %v3166_v32  ;;  %v2867_v13 = vpop.f32.mrb[13].mxu0  ;;  %v1551_v26 = vsel %vm841_vm0, %v1542_v12, 0.0  ;;  %v1299_v49 = vld [vmem:[%s804_s22 + $0x20] sm:$0xff] }
 0x1f1   : > { %2831 = vmatprep.mubr.msk.f32.mxu1 %vm3168_vm2, %v3167_v33  ;;  %v1545_v14 = vpop.f32.mrb[14].mxu0 }
 0x1f2   : > { %v2868_v15 = vpop.f32.mrb[15].mxu0  ;;  %v1290_v14 = vld [vmem:[%s3460_s3 + $0x8] sm:$0xff] }
 0x1f3   : > { %v1291_v15 = vld [vmem:[%s3460_s3 + $0x10] sm:$0xff] }
 0x1f4   : > { %2832 = vmatmul.mubr.msk.f32.gmra.mrb[6].mxu1 %vm1102_vm3, %v959_v50  ;;  %v1300_v50 = vld [vmem:[%s804_s22 + $0x28] sm:$0xff] }
 0x1f5   : > { %2834 = vmatprep.mubr.msk.f32.mxu1 %vm3168_vm2, %v3167_v33 }
 0x1f8   : > { %2835 = vmatmul.mubr.msk.f32.gmra.mrb[8].mxu1 %vm1102_vm3, %v960_v51  ;;  %v1298_v51 = vld [vmem:[%s804_s22 + $0x18] sm:$0xff] }
 0x1f9   : > { %2843 = vmatprep.mubr.msk.f32.mxu1 %vm3168_vm2, %v3167_v33 }
 0x276   : > { %v1550_v22 = vpop.xlane.xlu1 %1549 }
 0x277   : > { %v1557_v24 = vmul.f32 0.0625, %v1550_v22 }
 0x279   : > { %v3422_v27 = vsub.f32 %v1502_v52, %v1557_v24  ;;  %v1456_v52 = vld [vmem:[%s814_s19 + $0x8] sm:$0xff]  ;;  %s2685_s19 = sshll.u32 %s3286_s0, 7  ;;  %s3169_s0 = smov [#allocation2]  }
 0x27a   : > { %v1294_v24 = vld [vmem:[%s3460_s3 + $0x28] sm:$0xff]  ;;  %s3105_s27 = sshll.u32 %s3169_s0, 4  ;;  %s3106_s27 = int_to_ptr.vmem [resolvable:$false] %s3105_s27 }
 0x27b   : > { %v1563_v29 = vmul.f32 %v3422_v27, %v3422_v27  ;;  %s3107_s21 = scalar_lea.vmem %s3106_s27, 256 }
 0x27d   : > { %v1566_v30 = vsel %vm841_vm0, %v1563_v29, 0.0  ;;  %v3502_v29 = vld [vmem:[%s794_s24 + $0x20] sm:$0xff] }
 0x2c3   : > { %v1178_v57 = vpop.f32.mrb[4].mxu1 }
 0x2c4   : > { %v2830_v58 = vpop.f32.mrb[5].mxu1  ;;  %v1179_v60 = vadd.f32 %v1178_v57, %v1090_v59  ;;  %v1462_v57 = vld [vmem:[%s824_s23 + $0x8] sm:$0xff]  ;;  %v1461_v59 = vld [vmem:[%s824_s23] sm:$0xff]  ;;  %s755_s23 = sand.u32 1, %s3155_s28  }
 0x2c5   : > { %v1296_v58 = vld [vmem:[%s804_s22 + $0x8] sm:$0xff]  ;;  %s2381_s25 = scalar_lea.sflag [#allocation3], %s755_s23 }
 0x2c6   : > { %v1192_v3 = vmax.f32 %v1179_v60, 0.0  ;;  %v1295_v60 = vld [vmem:[%s804_s22] sm:$0xff]  ;;  %s2613_s22 = sshll.u32 %s755_s23, 3 }
 0x2c7   : > { %v1183_v62 = vpop.f32.mrb[6].mxu1 }
 0x2c8   : > { %v1184_v63 = vadd.f32 %v1183_v62, %v1095_v61  ;;  %v2833_v2 = vpop.f32.mrb[7].mxu1 }
 0x2ca   : > { %v1193_v4 = vmax.f32 %v1184_v63, 0.0 }
 0x2cb   : > { %v1188_v6 = vpop.f32.mrb[8].mxu1 }
 0x2cc   : > { %v2987_v7 = vpack.c.bf16 %v1193_v4, %v1192_v3  ;;  %v1189_v8 = vadd.f32 %v1188_v6, %v1100_v5  ;;  %v2836_v9 = vpop.f32.mrb[9].mxu1 }
 0x2ce   : > { %2988 = vmatpush3.bf16.msra.mxu1 %v2987_v7  ;;  %v1194_v11 = vmax.f32 %v1189_v8, 0.0 }
 0x2cf   : > { %2841 = vmatprep.subr.mxu1 %v3167_v33 }
 0x2d2   : > { %2842 = vmatpush3.msra.mxu1 %v1194_v11 }
 0x2d3   : > { %2844 = vmatmul.mubr.msk.f32.vlgmr.msra.gmra.mrb[10].mxu1 %vm1102_vm3, %v964_v10 }
 0x2d4   : > { %2848 = vmatprep.mubr.msk.f32.mxu1 %vm1331_vm4, %v1289_v54 }
 0x3a6   : > { %v1264_v19 = vpop.f32.mrb[10].mxu1 }
 0x3a7   : > { %v1268_v20 = vadd.f32 %v1264_v19, %v1066_v18  ;;  %v2845_v21 = vpop.f32.mrb[11].mxu1  ;;  %v1292_v19 = vld [vmem:[%s3460_s3 + $0x18] sm:$0xff] }
 0x3a8   : > { %v1293_v21 = vld [vmem:[%s3460_s3 + $0x20] sm:$0xff]  ;;  %s3516_s3 = scalar_lea.vmem %s3720_s13, %s3345_s29  ;;  %s3665_s29 = scalar_lea.hbm %s3725_s18, %s2685_s19 }
 0x3a9   : > { %v1274_v23 = vadd.f32 %v1272_v17, %v1268_v20 }
 0x3ab   : > { %v1275_v25 = vsel %vm841_vm0, %v1274_v23, 0.0 }
 0x3ac   : > { %1276 = vadd.xlane.f32.xlu0 %v1275_v25  ;;  %v3487_v25 = vld [vmem:[%s794_s24] sm:$0xff] }
 0x3b0   : > { %1552 = vadd.xlane.f32.xlu0 %v1551_v26  ;;  %v3492_v26 = vld [vmem:[%s794_s24 + $0x8] sm:$0xff] }
 0x3b4   : > { %1555 = vadd.xlane.f32.xlu0 %v1554_v28  ;;  %v3500_v28 = vld [vmem:[%s794_s24 + $0x18] sm:$0xff] }
 0x3b8   : > { %1567 = vadd.xlane.f32.xlu0 %v1566_v30  ;;  %v3508_v30 = vld [vmem:[%s794_s24 + $0x28] sm:$0xff] }
 0x439   : > { %v1277_v32 = vpop.xlane.xlu0 %1276 }
 0x43a   : > { %v1279_v34 = vmul.f32 0.0625, %v1277_v32  ;;  %v3519_v32 = vld [vmem:[%s3516_s3] sm:$0xff] }
 0x43b   : > { %2892 = vmatprep.mubr.msk.f32.mxu0 %vm1724_vm5, %v3519_v32 }
 0x43c   : > { %v3429_v35 = vsub.f32 %v1274_v23, %v1279_v34 }
 0x43d   : > { %v1553_v36 = vpop.xlane.xlu0 %1552 }
 0x43e   : > { %v1558_v37 = vmul.f32 0.0625, %v1553_v36  ;;  %v1281_v38 = vmul.f32 %v3429_v35, %v3429_v35 }
 0x440   : > { %v3433_v39 = vsub.f32 %v1542_v12, %v1558_v37  ;;  %v1282_v40 = vsel %vm841_vm0, %v1281_v38, 0.0 }
 0x441   : > { %1283 = vadd.xlane.f32.xlu1 %v1282_v40  ;;  %v1556_v41 = vpop.xlane.xlu0 %1555 }
 0x442   : > { %v1559_v42 = vmul.f32 0.0625, %v1556_v41  ;;  %v1564_v43 = vmul.f32 %v3433_v39, %v3433_v39 }
 0x444   : > { %v3439_v44 = vsub.f32 %v3382_v31, %v1559_v42  ;;  %v1569_v45 = vsel %vm841_vm0, %v1564_v43, 0.0 }
 0x445   : > { %1570 = vadd.xlane.f32.xlu1 %v1569_v45  ;;  %v1568_v61 = vpop.xlane.xlu0 %1567 }
 0x446   : > { %v1565_v46 = vmul.f32 %v3439_v44, %v3439_v44  ;;  %v1575_v62 = vmul.f32 0.0625, %v1568_v61 }
 0x448   : > { %v1572_v47 = vsel %vm841_vm0, %v1565_v46, 0.0  ;;  %v1578_v3 = vadd.f32 1e-05, %v1575_v62  ;;  %v3540_v62 = vld [vmem:[%s3516_s3 + $0x8] sm:$0xff] }
 0x449   : > { %1573 = vadd.xlane.f32.xlu0 %v1572_v47 }
 0x456   : > { %1313 = vperm.xlu1 %3083, %v1297_v48  }
 0x45a   : > { %1323 = vperm.xlu1 %3083, %v1299_v49  }
 0x45e   : > { %1328 = vperm.xlu1 %3083, %v1300_v50  }
 0x45f   : > { %1318 = vperm.xlu0 %3082, %v1298_v51  }
 0x462   : > { %1711 = vperm.xlu1 %3083, %v1456_v52  }
 0x463   : > { %1706 = vperm.xlu0 %3082, %v1455_v53  }
 0x466   : > { %1721 = vperm.xlu1 %3083, %v1458_v55  }
 0x467   : > { %1716 = vperm.xlu0 %3082, %v1457_v56  }
 0x46a   : > { %1916 = vperm.xlu1 %3083, %v1462_v57  }
 0x46b   : > { %1308 = vperm.xlu0 %3082, %v1296_v58  }
 0x46e   : > { %1911 = vperm.xlu1 %3083, %v1461_v59  }
 0x46f   : > { %1303 = vperm.xlu0 %3082, %v1295_v60  }
 0x4ce   : > { %v1284_v63 = vpop.xlane.xlu1 %1283 }
 0x4cf   : > { %v1285_v2 = vmul.f32 0.0625, %v1284_v63  ;;  %v3543_v63 = vld [vmem:[%s3516_s3 + $0x10] sm:$0xff] }
 0x4d1   : > { %v1286_v4 = vadd.f32 1e-05, %v1285_v2  ;;  %v3551_v2 = vld [vmem:[%s3516_s3 + $0x18] sm:$0xff] }
 0x4d2   : > { %v1571_v5 = vpop.xlane.xlu1 %1570 }
 0x4d3   : > { %3087 = vrsqrt.f32 %v1286_v4  ;;  %v1576_v6 = vmul.f32 0.0625, %v1571_v5 }
 0x4d4   : > { %3089 = vrsqrt.f32 %v1578_v3  ;;  %v3563_v3 = vld [vmem:[%s819_s26] sm:$0xff] }
 0x4d5   : > { %v1579_v7 = vadd.f32 1e-05, %v1576_v6 }
 0x4d6   : > { %v1574_v8 = vpop.xlane.xlu0 %1573  ;;  %v1314_v38 = vpop.permute.xlu1 %1313 }
 0x4d7   : > { %3091 = vrsqrt.f32 %v1579_v7  ;;  %v1577_v9 = vmul.f32 0.0625, %v1574_v8 }
 0x4d9   : > { %v1580_v10 = vadd.f32 1e-05, %v1577_v9 }
 0x4da   : > { %v1324_v41 = vpop.permute.xlu1 %1323 }
 0x4db   : > { %3093 = vrsqrt.f32 %v1580_v10 }
 0x4dd   : > { %v3088_v11 = vpop.eup %3087 }
 0x4de   : > { %v1288_v12 = vmul.f32 %v3088_v11, %v3429_v35  ;;  %v3090_v13 = vpop.eup %3089  ;;  %v1319_v42 = vpop.permute.xlu0 %1318 }
 0x4df   : > { %v1584_v17 = vmul.f32 %v3090_v13, %v3422_v27  ;;  %v3494_v27 = vld [vmem:[%s794_s24 + $0x10] sm:$0xff]  ;;  %v1329_v48 = vpop.permute.xlu1 %1328  ;;  %s757_s24 = scalar_lea.vmem [#allocation2], %s2613_s22 }
 0x4e0   : > { %2846 = vmatprep.subr.mxu1 %v1288_v12  ;;  %s2394_s1 = sshll.u32 %s757_s24, 4  ;;  %s3667_s1 = int_to_ptr.vmem [resolvable:$true] %s2394_s1 }
 0x4e1   : > { %v3092_v16 = vpop.eup %3091  ;;  %2847 = vmatpush3.msra.mxu1 %v1288_v12  ;;  %p3108_p0 = scmp.lt.s32.totalorder %s3667_s1, %s3106_s27 }
 0x4e2   : > { %2849 = vmatmul.mubr.msk.f32.vlgmr.msra.gmra.mrb[12].mxu1 %vm1331_vm4, %v1290_v14  ;;  %v1585_v18 = vmul.f32 %v3092_v16, %v3433_v39  ;;  %v3569_v5 = vpop.permute.xlu0 %1706 }
 0x4e3   : > { %2851 = vmatprep.mubr.msk.f32.mxu1 %vm1331_vm4, %v1291_v15  ;;  %v3567_v4 = vpop.permute.xlu1 %1711 }
 0x4e4   : > { %v2989_v20 = vpack.c.bf16 %v1585_v18, %v1584_v17 }
 0x4e5   : > { %v3094_v22 = vpop.eup %3093 }
 0x4e6   : > { %2852 = vmatmul.mubr.msk.f32.gmra.mrb[14].mxu1 %vm1331_vm4, %v1292_v19  ;;  %2990 = vmatprep.subr.bf16.mxu1 %v2989_v20  ;;  %v1586_v23 = vmul.f32 %v3094_v22, %v3439_v44  ;;  %v3575_v13 = vpop.permute.xlu0 %1716 }
 0x4e7   : > { %2992 = vmatpush3.bf16.msra.mxu1 %v2989_v20  ;;  %2854 = vmatprep.mubr.msk.f32.mxu1 %vm1331_vm4, %v1293_v21  ;;  %v3573_v10 = vpop.permute.xlu1 %1721  ;;  %v3579_v21 = vld [vmem:[%s819_s26 + $0x8] sm:$0xff]  ;;  %s3101_s26 = scalar_lea.vmem %s3667_s1, 128 }
 0x4e8   : > { %2873 = vmatprep.subr.mxu1 %v1586_v23  ;;  %p3102_p11 = scmp.ne.s32.totalorder %s3667_s1, %s3101_s26  ;;  %p3109_p1 = scmp.lt.s32.totalorder %s3107_s21, %s3101_s26 }
 0x4ea   : > { %2855 = vmatmul.mubr.msk.f32.gmra.mrb[16].mxu1 %vm1331_vm4, %v1294_v24  ;;  %v1309_v22 = vpop.permute.xlu0 %1308  ;;  %p3103_p12 = pnand %p3102_p11, %p3303_p5  ;;  %p3110_p2 = por %p3109_p1, %p3108_p0 }
 0x4eb   : > { %2874 = vmatpush3.msra.mxu1 %v1586_v23  ;;  %2875 = vmatprep.mubr.msk.f32.mxu1 %vm1102_vm3, %v3487_v25 }
 0x4ec   : > { %p3104_p13 = pneg %p3103_p12 }
 0x4ee   : > { %2876 = vmatmul.mubr.msk.f32.vlgmr.msra.gmra.mrb[18].mxu1 %vm1102_vm3, %v3492_v26  ;;  %p3111_p3 = pnand %p3110_p2, %p3104_p13 }
 0x4ef   : > { %2878 = vmatprep.mubr.msk.f32.mxu1 %vm1102_vm3, %v3494_v27 }
 0x4f2   : > { %2879 = vmatmul.mubr.msk.f32.gmra.mrb[20].mxu1 %vm1102_vm3, %v3500_v28 }
 0x4f3   : > { %2881 = vmatprep.mubr.msk.f32.mxu1 %vm1102_vm3, %v3502_v29 }
 0x4f6   : > { %2882 = vmatmul.mubr.msk.f32.gmra.mrb[22].mxu1 %vm1102_vm3, %v3508_v30 }
 0x4f7   : > { %2906 = vmatprep.mubr.msk.f32.mxu1 %vm1724_vm5, %v3563_v3 }
 0x5b5   : > { %v3523_v34 = vpop.f32.mrb[12].mxu1 }
 0x5b6   : > { %v3525_v35 = vpop.f32.mrb[13].mxu1  ;;  %v3588_v23 = vadd.f32 %v3523_v34, %v1309_v22 }
 0x5b9   : > { %v2853_v36 = vpop.f32.mrb[14].mxu1 }
 0x5ba   : > { %v1426_v37 = vpop.f32.mrb[15].mxu1  ;;  %v3527_v43 = vadd.f32 %v2853_v36, %v1319_v42 }
 0x5bb   : > { %v3529_v44 = vadd.f32 %v1426_v37, %v1314_v38  ;;  %v3591_v38 = vpop.permute.xlu1 %1916 }
 0x5bd   : > { %v2856_v39 = vpop.f32.mrb[16].mxu1 }
 0x5be   : > { %v1436_v40 = vpop.f32.mrb[17].mxu1  ;;  %v3533_v50 = vadd.f32 %v2856_v39, %v1329_v48 }
 0x5bf   : > { %v3535_v52 = vadd.f32 %v1436_v40, %v1324_v41  ;;  %v1304_v40 = vpop.permute.xlu0 %1303 }
 0x5c0   : > { %v3595_v41 = vadd.f32 %v3525_v35, %v1304_v40 }
 0x5c5   : > { %v2880_v45 = vpop.f32.mrb[20].mxu1 }
 0x5c6   : > { %v1687_v46 = vadd.f32 %v2880_v45, %v3527_v43  ;;  %v1681_v47 = vpop.f32.mrb[21].mxu1 }
 0x5c7   : > { %v1682_v49 = vadd.f32 %v1681_v47, %v3529_v44  ;;  %v3598_v47 = vpop.permute.xlu1 %1911 }
 0x5c8   : > { %v1701_v51 = vmax.f32 %v1687_v46, 0.0 }
 0x5c9   : > { %v1700_v53 = vmax.f32 %v1682_v49, 0.0  ;;  %v2883_v54 = vpop.f32.mrb[22].mxu1 }
 0x5ca   : > { %v1697_v55 = vadd.f32 %v2883_v54, %v3533_v50  ;;  %v1691_v56 = vpop.f32.mrb[23].mxu1 }
 0x5cb   : > { %v2993_v57 = vpack.c.bf16 %v1701_v51, %v1700_v53  ;;  %v1692_v58 = vadd.f32 %v1691_v56, %v3535_v52 }
 0x5cc   : > { %v1703_v59 = vmax.f32 %v1697_v55, 0.0 }
 0x5cd   : > { %v1702_v60 = vmax.f32 %v1692_v58, 0.0  ;;  %2994 = vmatprep.subr.bf16.mxu0 %v2993_v57 }
 0x5ce   : > { %2996 = vmatpush3.bf16.msra.mxu0 %v2993_v57 }
 0x5cf   : > { %v2997_v61 = vpack.c.bf16 %v1703_v59, %v1702_v60 }
 0x5d1   : > { %2998 = vmatprep.subr.bf16.mxu0 %v2997_v61 }
 0x5d2   : > { %3000 = vmatpush3.bf16.msra.mxu0 %v2997_v61 }
 0x5d3   : > { %2909 = vmatprep.subr.bf16.mxu0 %v3167_v33 }
 0x5d5   : > { %2893 = vmatmul.mubr.msk.f32.vlgmr.msra.gmra.mrb[16].mxu0 %vm1724_vm5, %v3540_v62 }
 0x5d6   : > { %2895 = vmatprep.mubr.msk.f32.mxu0 %vm1724_vm5, %v3543_v63  ;;  %2910 = vmatpush3.bf16.msra.mxu0 %v3316_v0 }
 0x5d9   : > { %2896 = vmatmul.mubr.msk.f32.gmra.mrb[18].mxu0 %vm1724_vm5, %v3551_v2 }
 0x5da   : > { %2911 = vmatprep.mubr.msk.bf16.mxu0 %vm3168_vm2, %v3167_v33 }
 0x6a8   : > { %v2894_v0 = vpop.f32.mrb[16].mxu0 }
 0x6a9   : > { %v1809_v6 = vadd.f32 %v2894_v0, %v3567_v4  ;;  %v1803_v7 = vpop.f32.mrb[17].mxu0 }
 0x6aa   : > { %v1804_v8 = vadd.f32 %v1803_v7, %v3569_v5 }
 0x6ab   : > { %v1823_v9 = vmax.f32 %v1809_v6, 0.0 }
 0x6ac   : > { %v1822_v11 = vmax.f32 %v1804_v8, 0.0  ;;  %v2897_v12 = vpop.f32.mrb[18].mxu0 }
 0x6ad   : > { %v1819_v14 = vadd.f32 %v2897_v12, %v3573_v10  ;;  %v1813_v15 = vpop.f32.mrb[19].mxu0 }
 0x6ae   : > { %v3001_v16 = vpack.c.bf16 %v1823_v9, %v1822_v11  ;;  %v1814_v17 = vadd.f32 %v1813_v15, %v3575_v13 }
 0x6af   : > { %v1825_v18 = vmax.f32 %v1819_v14, 0.0 }
 0x6b0   : > { %v1824_v19 = vmax.f32 %v1814_v17, 0.0  ;;  %3002 = vmatprep.subr.bf16.mxu1 %v3001_v16 }
 0x6b1   : > { %3004 = vmatpush3.bf16.msra.mxu1 %v3001_v16 }
 0x6b2   : > { %v3005_v20 = vpack.c.bf16 %v1825_v18, %v1824_v19 }
 0x6b4   : > { %3006 = vmatprep.subr.bf16.mxu1 %v3005_v20 }
 0x6b5   : > { %3008 = vmatpush3.bf16.msra.mxu1 %v3005_v20 }
 0x6b6   : > { %2915 = vmatprep.subr.bf16.mxu1 %v3167_v33 }
 0x6b8   : > { %2907 = vmatmul.mubr.msk.f32.vlgmr.msra.gmra.mrb[18].mxu1 %vm1724_vm5, %v3579_v21 }
 0x6b9   : > { %2916 = vmatpush3.bf16.msra.mxu1 %v3321_v1  ;;  %2917 = vmatprep.mubr.msk.bf16.mxu1 %vm3168_vm2, %v3167_v33 }
 0x78b   : > { %v2908_v24 = vpop.f32.mrb[18].mxu1 }
 0x78c   : > { %v3029_v36 = vadd.f32 %v2908_v24, %v3588_v23  ;;  %v1898_v37 = vpop.f32.mrb[19].mxu1 }
 0x78d   : > { %v3030_v45 = vadd.f32 %v1898_v37, %v3595_v41 }
 0x78e   : > { %v1920_v39 = vadd.f32 %v3029_v36, %v3591_v38 }
 0x78f   : > { %v1919_v48 = vadd.f32 %v3030_v45, %v3598_v47 }
 0x790   : > { %v1922_v1 = vmul.f32 0.16666667, %v1920_v39 }
 0x792   : > { %v1923_v42 = vadd.f32 0.5, %v1922_v1 }
 0x794   : > { %v1924_v46 = vmax.f32 %v1923_v42, 0.0 }
 0x796   : > { %v1925_v34 = vmin.f32 %v1924_v46, 1.0 }
 0x798   : > { %v1926_v49 = vmul.f32 %v1925_v34, %v1919_v48 }
 0x79a   : > { %v1927_v51 = vmul.f32 0.1, %v1926_v49 }
 0x79c   : > { %v3602_v53 = vadd.f32 %v1927_v51, %v3382_v31 }
 0x79e   : > { %v1929_v54 = vpack.c.bf16 %v3602_v53, %v3602_v53 }
 0x7a0   : > { %2912 = vmatmul.mubr.msk.bf16.vlgmr.msra.gmra.mrb[20].mxu0 %vm841_vm0, %v1929_v54  ;;  %2918 = vmatmul.mubr.msk.bf16.vlgmr.msra.gmra.mrb[24].mxu1 %vm841_vm0, %v1929_v54 }
 0x7a1   : > { %2927 = vmatprep.mubr.msk.f32.mxu0 %vm1102_vm3, %v3487_v25  ;;  %2944 = vmatprep.mubr.msk.f32.mxu1 %vm1724_vm5, %v3519_v32  ;;  %v2019_v25 = vsel %vm841_vm0, %v3602_v53, 0.0 }
 0x873   : > { %v1967_v35 = vpop.f32.mrb[20].mxu0  ;;  %v2007_v55 = vpop.f32.mrb[24].mxu1 }
 0x874   : > { %v2913_v56 = vpop.f32.mrb[21].mxu0  ;;  %v2919_v57 = vpop.f32.mrb[25].mxu1  ;;  %v2016_v31 = vsel %vm841_vm0, %v2007_v55, 0.0  ;;  %v2013_v58 = vsel %vm841_vm0, %v1967_v35, 0.0 }
 0x875   : > { %2017 = vadd.xlane.f32.xlu1 %v2016_v31  ;;  %v2010_v59 = vpop.f32.mrb[26].mxu1  ;;  %2014 = vadd.xlane.f32.xlu0 %v2013_v58  ;;  %v1970_v60 = vpop.f32.mrb[22].mxu0 }
 0x876   : > { %v2914_v61 = vpop.f32.mrb[23].mxu0  ;;  %v2920_v0 = vpop.f32.mrb[27].mxu1 }
 0x879   : > { %2020 = vadd.xlane.f32.xlu0 %v2019_v25 }
 0x902   : > { %v2018_v6 = vpop.xlane.xlu1 %2017  ;;  %v2015_v32 = vpop.xlane.xlu0 %2014 }
 0x903   : > { %v2023_v7 = vmul.f32 0.0625, %v2018_v6  ;;  %v2022_v8 = vmul.f32 0.0625, %v2015_v32 }
 0x905   : > { %v2026_v9 = vsub.f32 %v2007_v55, %v2023_v7  ;;  %v2025_v11 = vsub.f32 %v1967_v35, %v2022_v8 }
 0x906   : > { %v2021_v12 = vpop.xlane.xlu0 %2020 }
 0x907   : > { %v2024_v14 = vmul.f32 0.0625, %v2021_v12  ;;  %v2029_v15 = vmul.f32 %v2026_v9, %v2026_v9  ;;  %v2028_v16 = vmul.f32 %v2025_v11, %v2025_v11 }
 0x909   : > { %v2027_v17 = vsub.f32 %v3602_v53, %v2024_v14  ;;  %v2034_v18 = vsel %vm841_vm0, %v2029_v15, 0.0  ;;  %v2031_v19 = vsel %vm841_vm0, %v2028_v16, 0.0 }
 0x90a   : > { %2035 = vadd.xlane.f32.xlu1 %v2034_v18  ;;  %2032 = vadd.xlane.f32.xlu0 %v2031_v19 }
 0x90b   : > { %v2030_v20 = vmul.f32 %v2027_v17, %v2027_v17 }
 0x90d   : > { %v2037_v22 = vsel %vm841_vm0, %v2030_v20, 0.0 }
 0x90e   : > { %2038 = vadd.xlane.f32.xlu0 %v2037_v22 }
 0x997   : > { %v2036_v24 = vpop.xlane.xlu1 %2035  ;;  %v2033_v36 = vpop.xlane.xlu0 %2032 }
 0x998   : > { %v2041_v37 = vmul.f32 0.0625, %v2036_v24  ;;  %v2040_v39 = vmul.f32 0.0625, %v2033_v36 }
 0x99a   : > { %v2044_v40 = vadd.f32 1e-05, %v2041_v37  ;;  %v2043_v1 = vadd.f32 1e-05, %v2040_v39 }
 0x99b   : > { %v2039_v42 = vpop.xlane.xlu0 %2038 }
 0x99c   : > { %3095 = vrsqrt.f32 %v2044_v40  ;;  %v2042_v45 = vmul.f32 0.0625, %v2039_v42 }
 0x99d   : > { %3097 = vrsqrt.f32 %v2043_v1 }
 0x99e   : > { %v2045_v46 = vadd.f32 1e-05, %v2042_v45 }
 0x9a0   : > { %3099 = vrsqrt.f32 %v2045_v46 }
 0x9a6   : > { %v3096_v34 = vpop.eup %3095 }
 0x9a7   : > { %v3098_v48 = vpop.eup %3097  ;;  %v2050_v49 = vmul.f32 %v3096_v34, %v2026_v9 }
 0x9a8   : > { %v2049_v51 = vmul.f32 %v3098_v48, %v2025_v11 }
 0x9aa   : > { %v3100_v54 = vpop.eup %3099  ;;  %v3009_v35 = vpack.c.bf16 %v2050_v49, %v2049_v51 }
 0x9ab   : > { %v2051_v55 = vmul.f32 %v3100_v54, %v2027_v17 }
 0x9ac   : > { %3010 = vmatprep.subr.bf16.mxu0 %v3009_v35 }
 0x9ad   : > { %3012 = vmatpush3.bf16.msra.mxu0 %v3009_v35 }
 0x9ae   : > { %2925 = vmatprep.subr.mxu0 %v2051_v55 }
 0x9b1   : > { %2926 = vmatpush3.msra.mxu0 %v2051_v55 }
 0x9b2   : > { %2928 = vmatmul.mubr.msk.f32.vlgmr.msra.gmra.mrb[24].mxu0 %vm1102_vm3, %v3492_v26 }
 0x9b3   : > { %2930 = vmatprep.mubr.msk.f32.mxu0 %vm1102_vm3, %v3494_v27 }
 0x9b6   : > { %2931 = vmatmul.mubr.msk.f32.gmra.mrb[26].mxu0 %vm1102_vm3, %v3500_v28 }
 0x9b7   : > { %2933 = vmatprep.mubr.msk.f32.mxu0 %vm1102_vm3, %v3502_v29 }
 0x9ba   : > { %2934 = vmatmul.mubr.msk.f32.gmra.mrb[28].mxu0 %vm1102_vm3, %v3508_v30 }
 0x9bb   : > { %2958 = vmatprep.mubr.msk.f32.mxu0 %vm1724_vm5, %v3563_v3 }
 0xa89   : > { %v2932_v56 = vpop.f32.mrb[26].mxu0 }
 0xa8a   : > { %v2134_v57 = vadd.f32 %v2932_v56, %v3527_v43  ;;  %v2128_v31 = vpop.f32.mrb[27].mxu0 }
 0xa8b   : > { %v2129_v26 = vadd.f32 %v2128_v31, %v3529_v44 }
 0xa8c   : > { %v2148_v58 = vmax.f32 %v2134_v57, 0.0 }
 0xa8d   : > { %v2147_v27 = vmax.f32 %v2129_v26, 0.0  ;;  %v2935_v59 = vpop.f32.mrb[28].mxu0 }
 0xa8e   : > { %v2144_v28 = vadd.f32 %v2935_v59, %v3533_v50  ;;  %v2138_v60 = vpop.f32.mrb[29].mxu0 }
 0xa8f   : > { %v3013_v61 = vpack.c.bf16 %v2148_v58, %v2147_v27  ;;  %v2139_v29 = vadd.f32 %v2138_v60, %v3535_v52 }
 0xa90   : > { %v2150_v0 = vmax.f32 %v2144_v28, 0.0 }
 0xa91   : > { %v2149_v30 = vmax.f32 %v2139_v29, 0.0  ;;  %3014 = vmatprep.subr.bf16.mxu1 %v3013_v61 }
 0xa92   : > { %3016 = vmatpush3.bf16.msra.mxu1 %v3013_v61 }
 0xa93   : > { %v3017_v3 = vpack.c.bf16 %v2150_v0, %v2149_v30 }
 0xa95   : > { %3018 = vmatprep.subr.bf16.mxu1 %v3017_v3 }
 0xa96   : > { %3020 = vmatpush3.bf16.msra.mxu1 %v3017_v3 }
 0xa97   : > { %2961 = vmatprep.subr.bf16.mxu1 %v3167_v33 }
 0xa99   : > { %2945 = vmatmul.mubr.msk.f32.vlgmr.msra.gmra.mrb[28].mxu1 %vm1724_vm5, %v3540_v62 }
 0xa9a   : > { %2947 = vmatprep.mubr.msk.f32.mxu1 %vm1724_vm5, %v3543_v63 }
 0xa9d   : > { %2948 = vmatmul.mubr.msk.f32.gmra.mrb[30].mxu1 %vm1724_vm5, %v3551_v2 }
 0xa9e   : > { %2963 = vmatprep.mubr.msk.bf16.mxu1 %vm3168_vm2, %v3167_v33 }
 0xb6c   : > { %v2946_v43 = vpop.f32.mrb[28].mxu1 }
 0xb6d   : > { %v2223_v44 = vadd.f32 %v2946_v43, %v3567_v4  ;;  %v2217_v50 = vpop.f32.mrb[29].mxu1  ;;  %v3086_v4 = vld [vmem:[%s3724_s17] sm:$0xff]  }
 0xb6e   : > { %v2218_v52 = vadd.f32 %v2217_v50, %v3569_v5  ;;  %2962 = vmatpush3.bf16.msra.mxu1 %v3086_v4 }
 0xb6f   : > { %v2237_v25 = vmax.f32 %v2223_v44, 0.0 }
 0xb70   : > { %v2236_v6 = vmax.f32 %v2218_v52, 0.0  ;;  %v2949_v32 = vpop.f32.mrb[30].mxu1 }
 0xb71   : > { %v2233_v62 = vadd.f32 %v2949_v32, %v3573_v10  ;;  %v2227_v7 = vpop.f32.mrb[31].mxu1 }
 0xb72   : > { %v3021_v8 = vpack.c.bf16 %v2237_v25, %v2236_v6  ;;  %v2228_v63 = vadd.f32 %v2227_v7, %v3575_v13 }
 0xb73   : > { %v2239_v9 = vmax.f32 %v2233_v62, 0.0 }
 0xb74   : > { %v2238_v2 = vmax.f32 %v2228_v63, 0.0  ;;  %3022 = vmatprep.subr.bf16.mxu0 %v3021_v8 }
 0xb75   : > { %3024 = vmatpush3.bf16.msra.mxu0 %v3021_v8 }
 0xb76   : > { %v3025_v33 = vpack.c.bf16 %v2239_v9, %v2238_v2 }
 0xb78   : > { %3026 = vmatprep.subr.bf16.mxu0 %v3025_v33 }
 0xb79   : > { %3028 = vmatpush3.bf16.msra.mxu0 %v3025_v33 }
 0xb7c   : > { %2959 = vmatmul.mubr.msk.f32.vlgmr.msra.gmra.mrb[24].mxu0 %vm1724_vm5, %v3579_v21 }
 0xc4f   : > { %v2960_v5 = vpop.f32.mrb[24].mxu0 }
 0xc50   : > { %v3031_v10 = vadd.f32 %v2960_v5, %v3588_v23  ;;  %v2306_v13 = vpop.f32.mrb[25].mxu0 }
 0xc51   : > { %v3032_v15 = vadd.f32 %v2306_v13, %v3595_v41 }
 0xc52   : > { %v2318_v11 = vadd.f32 %v3031_v10, %v3591_v38 }
 0xc53   : > { %v2317_v21 = vadd.f32 %v3032_v15, %v3598_v47 }
 0xc54   : > { %v2319_v12 = vmul.f32 0.16666667, %v2318_v11 }
 0xc56   : > { %v2320_v14 = vadd.f32 0.5, %v2319_v12 }
 0xc58   : > { %v2321_v16 = vmax.f32 %v2320_v14, 0.0 }
 0xc5a   : > { %v2322_v17 = vmin.f32 %v2321_v16, 1.0 }
 0xc5c   : > { %v2323_v18 = vmul.f32 %v2322_v17, %v2317_v21 }
 0xc5e   : > { %v2324_v19 = vmul.f32 0.1, %v2323_v18 }
 0xc60   : > { %v2325_v20 = vadd.f32 %v2324_v19, %v3602_v53 }
 0xc62   : > { %v2326_v22 = vpack.c.bf16 %v2325_v20, %v2325_v20 }
 0xc64   : > { %2964 = vmatmul.mubr.msk.bf16.vlgmr.msra.gmra.mrb[32].mxu1 %vm841_vm0, %v2326_v22 }
 0xd37   : > { %v2372_v23 = vpop.f32.mrb[32].mxu1 }
 0xd38   : > { %2379 = vst.msk [vmem:[%s757_s24] sm:$0xff] %vm2378_vm6, %v2372_v23  ;;  %v2965_v38 = vpop.f32.mrb[33].mxu1 }
 0xd39   : > { %v2375_v41 = vpop.f32.mrb[34].mxu1 }
 0xd3a   : > { %3114 = shalt.err (!%p3111_p3)
}
 0xd3b   : > { %s3115_s23 = scalar_lea.hbm %s3665_s29, 128  ;;  %s3119_s24 = scalar_lea.hbm %s3725_s18, 256 }
 0xd3c   : > { %p3116_p4 = scmp.ne.s32.totalorder %s3665_s29, %s3115_s23  ;;  %p3120_p9 = scmp.lt.u32.totalorder %s3665_s29, %s3725_s18 }
 0xd3d   : > { %p3121_p10 = scmp.lt.u32.totalorder %s3119_s24, %s3115_s23  ;;  %p3123_p12 = scmp.lt.u32.totalorder %s3115_s23, %s3665_s29 }
 0xd3e   : > { %p3117_p7 = pnand %p3116_p4, %p3303_p5 }
 0xd3f   : > { %p3122_p11 = por %p3121_p10, %p3120_p9 }
 0xd40   : > { %p3118_p8 = pneg %p3117_p7 }
 0xd41   : > { %p3124_p13 = por %p3123_p12, %p3122_p11 }
 0xd43   : > { %p3125_p0 = pnand %p3124_p13, %p3118_p8 }
 0xd45   : > { %3128 = shalt.err (!%p3125_p0)
}
 0xd46   : > { %3039 = dma.vmem_to_hbm [thread:$0]  (%p3303_p5), %s3667_s1, 128, %s3665_s29, %s2381_s25   ;;  %v2966_v47 = vpop.f32.mrb[35].mxu1 }
 0xd47 PF: > { %s3749_s26 = sld [smem:[#allocation5_spill]]  ;;  %p3045_p1 = scmp.ge.s32.totalorder %s3163_s30, 2 }
 0xd49   : > { %p3042_p2 = pnand %p3045_p1, %p3307_p6 }
 0xd4d   : > { %s2406_s27 = sand.u32 1, %s3749_s26  }
 0xd4e   : > { %s2407_s21 = scalar_lea.sflag [#allocation3], %s2406_s27 }
 0xd4f   : > { %3146 = dma.done.wait (!%p3042_p2), %s2407_s21, 128  }
 0xd50   : > { %3148 = vsyncadd (!%p3042_p2), %s2407_s21, 4294967168  ;;  %s3751_s30 = sld [smem:[#allocation7_spill]]  ;;  %s3752_s23 = sld [smem:[#allocation6_spill]] }
 0xd51   : > { %s3753_s29 = sld [smem:[#allocation8_spill]]  ;;  %s3754_s27 = smov %s3155_s28 }
 0xd56   : > { %p28_p3 = scmp.ge.s32.totalorder %s3751_s30, 4   ;;  %s3755_s28 = smov %s3752_s23 }
 0xd58   :  { %30 = sbr.rel (!%p28_p3) target bundleno = 8 (0x8), region = 166 }
 0xd5f   :  { %2412 = vsyncpa [#allocation3], 1 }
 0xd60   :  { %2414 = vsyncpa [#allocation3 + $0x1], 1 }

</bundles_post_ra>
